<compile_context>
chip_gen: v7x
topology: tpu7x:2x2x1
jax: 0.10.0
libtpu: 0.0.40
codegen_flags: <defaults>
</compile_context>

<pallas_src>
import jax
import jax.numpy as jnp
from jax.experimental import pallas as pl
from jax.experimental.pallas import tpu as pltpu

FEAT = 64
GRID_SIZE = 5
SPLINE_ORDER = 3
GRID_RANGE = (-1.0, 1.0)
N_BASES = GRID_SIZE + SPLINE_ORDER      # 8 spline bases per input feature
OUT_DIM = 2
OUT_PAD = 128                           # lane-dense padded output width


def _kan_knots():
    """Static (python float) knot vector shared by all input features."""
    h = (GRID_RANGE[1] - GRID_RANGE[0]) / GRID_SIZE
    return [GRID_RANGE[0] + h * j
            for j in range(-SPLINE_ORDER, GRID_SIZE + SPLINE_ORDER + 1)]


def _spline_bases(h):
    """Cubic B-spline bases via unrolled Cox-de Boor recursion.

    All knot differences are compile-time python floats, so the divides are
    pre-folded into reciprocal constants (VALU multiplies, no EUP divides).
    Works both inside the Pallas kernel and in the pure-JAX reference.
    """
    f32 = jnp.float32
    t = _kan_knots()
    bases = [((h >= t[j]) & (h < t[j + 1])).astype(f32)
             for j in range(len(t) - 1)]                      # 11 order-0 bases
    for k in range(1, SPLINE_ORDER + 1):
        new_bases = []
        for j in range(len(bases) - 1):
            inv_l = 1.0 / (t[j + k] - t[j])
            inv_r = 1.0 / (t[j + k + 1] - t[j + 1])
            new_bases.append((h - t[j]) * inv_l * bases[j]
                             + (t[j + k + 1] - h) * inv_r * bases[j + 1])
        bases = new_bases
    return bases                                              # N_BASES arrays


# --------------------------------------------------------------------------
# Pallas kernel: whole fc_pipeline for one batch tile.
# --------------------------------------------------------------------------
def pkan_kernel(x_ref, w1, b1, w2, b2, w3, b3,
                kan_base_w, kan_spline_w,
                w4, b4, w5, b5, w6p, b6p, out_ref):
    f32 = jnp.float32
    x = x_ref[...]                                            # (TB, 64) f32

    def dense_relu(h, w_ref, b_ref):
        # operands cast to the (possibly bf16) weight dtype; f32 accumulation.
        hv = jnp.dot(h.astype(w_ref.dtype), w_ref[...],
                     preferred_element_type=f32) + b_ref[...]
        return jnp.maximum(hv, 0.0)

    h = dense_relu(x, w1, b1)                                 # (TB, 256)
    h = dense_relu(h, w2, b2)                                 # (TB, 128)
    h = dense_relu(h, w3, b3)                                 # (TB, 64)
    # Dropout(p) layers -> identity (inference).

    # ---------------- KAN layer: KANLinear(64, 64) ----------------
    # base path: silu(h) @ base_weight   (elementwise kept in f32)
    silu = h * (1.0 / (1.0 + jnp.exp(-h)))
    kan = jnp.dot(silu.astype(kan_base_w.dtype), kan_base_w[...],
                  preferred_element_type=f32)                 # (TB, 64)

    # spline path: build all 8 bases, then ONE fused K=512 matmul instead of
    # 8 serial K=64 accumulations.
    bases = _spline_bases(h)                                  # 8 x (TB, 64) f32
    bases_cat = jnp.concatenate(bases, axis=-1)               # (TB, 512)
    kan = kan + jnp.dot(bases_cat.astype(kan_spline_w.dtype),
                        kan_spline_w[...],
                        preferred_element_type=f32)           # (TB, 64)

    # ---------------- tail MLP ----------------
    h = dense_relu(kan, w4, b4)                               # (TB, 32)
    h = dense_relu(h, w5, b5)                                 # (TB, 16)
    # lane-dense final projection: (16, 128) zero-padded weight, unmasked store
    out = jnp.dot(h.astype(w6p.dtype), w6p[...],
                  preferred_element_type=f32) + b6p[...]      # (TB, 128)
    out_ref[...] = out


# --------------------------------------------------------------------------
# Wrapper
# --------------------------------------------------------------------------
def _round_up(n, m):
    return (n + m - 1) // m * m


def pkan_forward(x, params, tile_b=256, mxu_dtype=jnp.bfloat16):
    B, F = x.shape
    assert F == FEAT
    (w1, b1, w2, b2, w3, b3, kb, ks, w4, b4, w5, b5, w6, b6) = params

    # Fuse spline matmuls: (8, 64, 64) -> (512, 64), matching concat order of
    # the 8 (TB, 64) basis blocks along the lane axis.
    ks_flat = ks.reshape(N_BASES * FEAT, FEAT)

    # Lane-dense output: pad the last projection to 128 output lanes; the
    # wrapper slices [:, :2] afterwards (free layout plumbing).
    w6p = jnp.zeros((w6.shape[0], OUT_PAD), jnp.float32).at[:, :OUT_DIM].set(w6)
    b6p = jnp.zeros((1, OUT_PAD), jnp.float32).at[:, :OUT_DIM].set(b6)

    mx = lambda w: w.astype(mxu_dtype)
    weights = (mx(w1), b1, mx(w2), b2, mx(w3), b3,
               mx(kb), mx(ks_flat),
               mx(w4), b4, mx(w5), b5, mx(w6p), b6p)

    # Batch tile: big enough to amortize per-grid-step overhead and fill the
    # MXU, capped at 256 so the unrolled spline recursion stays out of vreg
    # spills.  Small batches collapse to a single grid step.
    tb = min(_round_up(tile_b, 8), _round_up(B, 8))
    Bp = _round_up(B, tb)
    if Bp != B:
        x = jnp.pad(x, ((0, Bp - B), (0, 0)))

    def rep(shape):
        # weight tiles are replicated across the batch grid
        return pl.BlockSpec(shape, lambda i, _n=len(shape): (0,) * _n)

    in_specs = [pl.BlockSpec((tb, FEAT), lambda i: (i, 0))]   # x
    in_specs += [rep(w.shape) for w in weights]
    out_specs = pl.BlockSpec((tb, OUT_PAD), lambda i: (i, 0))

    out = pl.pallas_call(
        pkan_kernel,
        out_shape=jax.ShapeDtypeStruct((Bp, OUT_PAD), jnp.float32),
        grid_spec=pltpu.PrefetchScalarGridSpec(
            num_scalar_prefetch=0,
            grid=(Bp // tb,),
            in_specs=in_specs,
            out_specs=out_specs,
        ),
        compiler_params=pltpu.CompilerParams(
            dimension_semantics=("parallel",)),
    )(x, *weights)
    return out[:B, :OUT_DIM]


# --------------------------------------------------------------------------
# Pure-JAX reference (for correctness check)
# --------------------------------------------------------------------------
def pkan_ref(x, params):
    (w1, b1, w2, b2, w3, b3, kb, ks, w4, b4, w5, b5, w6, b6) = params
    relu = lambda v: jnp.maximum(v, 0.0)
    h = relu(x @ w1 + b1)
    h = relu(h @ w2 + b2)
    h = relu(h @ w3 + b3)
    silu = h * jax.nn.sigmoid(h)
    kan = silu @ kb
    bases = _spline_bases(h)
    for j in range(len(bases)):
        kan = kan + bases[j] @ ks[j]
    h = relu(kan @ w4 + b4)
    h = relu(h @ w5 + b5)
    return h @ w6 + b6


# --------------------------------------------------------------------------
# Deterministic parameter construction (xavier_uniform weights, zero biases,
# matching PKAN._initialize_weights for the nn.Linear layers).
# --------------------------------------------------------------------------
def make_params(key):
    dims = [(FEAT, 256), (256, 128), (128, FEAT),       # before KAN
            (FEAT, 32), (32, 16), (16, OUT_DIM)]        # after KAN
    keys = jax.random.split(key, len(dims) + 2)

    def xavier(k, fan_in, fan_out):
        bound = (6.0 / (fan_in + fan_out)) ** 0.5
        return jax.random.uniform(k, (fan_in, fan_out), jnp.float32,
                                  -bound, bound)

    lins = []
    for k, (fi, fo) in zip(keys[:len(dims)], dims):
        lins.append((xavier(k, fi, fo), jnp.zeros((1, fo), jnp.float32)))

    kan_base = xavier(keys[-2], FEAT, FEAT)                       # (64, 64)
    kan_spline = 0.1 * jax.random.normal(keys[-1],
                                         (N_BASES, FEAT, FEAT), jnp.float32)

    (w1, b1), (w2, b2), (w3, b3), (w4, b4), (w5, b5), (w6, b6) = lins
    return (w1, b1, w2, b2, w3, b3, kan_base, kan_spline,
            w4, b4, w5, b5, w6, b6)


if __name__ == "__main__":
    key = jax.random.PRNGKey(0)
    pkey, xkey = jax.random.split(key)
    params = make_params(pkey)

    B = 16
    x = jax.random.normal(xkey, (B, FEAT), jnp.float32)
    ref = pkan_ref(x, params)

    # 1) exact-math check: f32 MXU operands vs the pure-JAX reference.
    out_f32 = jax.block_until_ready(
        pkan_forward(x, params, mxu_dtype=jnp.float32))
    assert out_f32.shape == (B, OUT_DIM)
    assert jnp.allclose(out_f32, ref, atol=1e-4, rtol=1e-4), (
        f"f32 max abs err {jnp.max(jnp.abs(out_f32 - ref))}")

    # 2) default fast path: bf16 MXU operands, f32 accumulation/elementwise.
    out_bf16 = jax.block_until_ready(pkan_forward(x, params))
    assert out_bf16.shape == (B, OUT_DIM)
    assert jnp.allclose(out_bf16, ref, atol=5e-2, rtol=5e-2), (
        f"bf16 max abs err {jnp.max(jnp.abs(out_bf16 - ref))}")

    print("KERNEL_OK")
</pallas_src>

<mosaic_0001>
module attributes {stable_mosaic.version = 11 : i64} {
  func.func @pkan_kernel(%arg0: i32, %arg1: memref<16x64xf32, #tpu.memory_space<vmem>>, %arg2: memref<64x256xf32, #tpu.memory_space<vmem>>, %arg3: memref<1x256xf32, #tpu.memory_space<vmem>>, %arg4: memref<256x128xf32, #tpu.memory_space<vmem>>, %arg5: memref<1x128xf32, #tpu.memory_space<vmem>>, %arg6: memref<128x64xf32, #tpu.memory_space<vmem>>, %arg7: memref<1x64xf32, #tpu.memory_space<vmem>>, %arg8: memref<64x64xf32, #tpu.memory_space<vmem>>, %arg9: memref<512x64xf32, #tpu.memory_space<vmem>>, %arg10: memref<64x32xf32, #tpu.memory_space<vmem>>, %arg11: memref<1x32xf32, #tpu.memory_space<vmem>>, %arg12: memref<32x16xf32, #tpu.memory_space<vmem>>, %arg13: memref<1x16xf32, #tpu.memory_space<vmem>>, %arg14: memref<16x128xf32, #tpu.memory_space<vmem>>, %arg15: memref<1x128xf32, #tpu.memory_space<vmem>>, %arg16: memref<16x128xf32, #tpu.memory_space<vmem>>) attributes {dimension_semantics = [#tpu.dimension_semantics<parallel>], iteration_bounds = array<i64: 1>, scalar_prefetch = 0 : i64, scratch_operands = 0 : i64, tpu.core_type = #tpu.core_type<tc>, window_params = [{transform_indices = @transform_0, window_bounds = array<i64: 16, 64>}, {pipeline_mode = #tpu.pipeline_mode<synchronous>, transform_indices = @transform_1, window_bounds = array<i64: 64, 256>}, {pipeline_mode = #tpu.pipeline_mode<synchronous>, transform_indices = @transform_2, window_bounds = array<i64: 1, 256>}, {pipeline_mode = #tpu.pipeline_mode<synchronous>, transform_indices = @transform_3, window_bounds = array<i64: 256, 128>}, {pipeline_mode = #tpu.pipeline_mode<synchronous>, transform_indices = @transform_4, window_bounds = array<i64: 1, 128>}, {pipeline_mode = #tpu.pipeline_mode<synchronous>, transform_indices = @transform_5, window_bounds = array<i64: 128, 64>}, {pipeline_mode = #tpu.pipeline_mode<synchronous>, transform_indices = @transform_6, window_bounds = array<i64: 1, 64>}, {pipeline_mode = #tpu.pipeline_mode<synchronous>, transform_indices = @transform_7, window_bounds = array<i64: 64, 64>}, {pipeline_mode = #tpu.pipeline_mode<synchronous>, transform_indices = @transform_8, window_bounds = array<i64: 512, 64>}, {pipeline_mode = #tpu.pipeline_mode<synchronous>, transform_indices = @transform_9, window_bounds = array<i64: 64, 32>}, {pipeline_mode = #tpu.pipeline_mode<synchronous>, transform_indices = @transform_10, window_bounds = array<i64: 1, 32>}, {pipeline_mode = #tpu.pipeline_mode<synchronous>, transform_indices = @transform_11, window_bounds = array<i64: 32, 16>}, {pipeline_mode = #tpu.pipeline_mode<synchronous>, transform_indices = @transform_12, window_bounds = array<i64: 1, 16>}, {pipeline_mode = #tpu.pipeline_mode<synchronous>, transform_indices = @transform_13, window_bounds = array<i64: 16, 128>}, {pipeline_mode = #tpu.pipeline_mode<synchronous>, transform_indices = @transform_14, window_bounds = array<i64: 1, 128>}, {transform_indices = @transform_15, window_bounds = array<i64: 16, 128>}]} {
    %c0 = arith.constant 0 : index
    %c0_0 = arith.constant 0 : index
    %0 = vector.load %arg1[%c0, %c0_0] : memref<16x64xf32, #tpu.memory_space<vmem>>, vector<16x64xf32>
    %c0_1 = arith.constant 0 : index
    %c0_2 = arith.constant 0 : index
    %1 = vector.load %arg2[%c0_1, %c0_2] : memref<64x256xf32, #tpu.memory_space<vmem>>, vector<64x256xf32>
    %cst = arith.constant dense<0.000000e+00> : vector<16x256xf32>
    %2 = tpu.matmul %0, %1, %cst {dimension_numbers = #tpu.dot_dimension_numbers<[1], [0], [0], [1], [0, 0, 1, 1], [], []>} : vector<16x64xf32>, vector<64x256xf32>, vector<16x256xf32> -> vector<16x256xf32>
    %c0_3 = arith.constant 0 : index
    %c0_4 = arith.constant 0 : index
    %3 = vector.load %arg3[%c0_3, %c0_4] : memref<1x256xf32, #tpu.memory_space<vmem>>, vector<1x256xf32>
    %4 = vector.broadcast %3 : vector<1x256xf32> to vector<16x256xf32>
    %5 = arith.addf %2, %4 : vector<16x256xf32>
    %cst_5 = arith.constant 0.000000e+00 : f32
    %6 = vector.broadcast %cst_5 : f32 to vector<16x256xf32>
    %7 = arith.maximumf %5, %6 : vector<16x256xf32>
    %c0_6 = arith.constant 0 : index
    %c0_7 = arith.constant 0 : index
    %8 = vector.load %arg4[%c0_6, %c0_7] : memref<256x128xf32, #tpu.memory_space<vmem>>, vector<256x128xf32>
    %cst_8 = arith.constant dense<0.000000e+00> : vector<16x128xf32>
    %9 = tpu.matmul %7, %8, %cst_8 {dimension_numbers = #tpu.dot_dimension_numbers<[1], [0], [0], [1], [0, 0, 1, 1], [], []>} : vector<16x256xf32>, vector<256x128xf32>, vector<16x128xf32> -> vector<16x128xf32>
    %c0_9 = arith.constant 0 : index
    %c0_10 = arith.constant 0 : index
    %10 = vector.load %arg5[%c0_9, %c0_10] : memref<1x128xf32, #tpu.memory_space<vmem>>, vector<1x128xf32>
    %11 = vector.broadcast %10 : vector<1x128xf32> to vector<16x128xf32>
    %12 = arith.addf %9, %11 : vector<16x128xf32>
    %cst_11 = arith.constant 0.000000e+00 : f32
    %13 = vector.broadcast %cst_11 : f32 to vector<16x128xf32>
    %14 = arith.maximumf %12, %13 : vector<16x128xf32>
    %c0_12 = arith.constant 0 : index
    %c0_13 = arith.constant 0 : index
    %15 = vector.load %arg6[%c0_12, %c0_13] : memref<128x64xf32, #tpu.memory_space<vmem>>, vector<128x64xf32>
    %cst_14 = arith.constant dense<0.000000e+00> : vector<16x64xf32>
    %16 = tpu.matmul %14, %15, %cst_14 {dimension_numbers = #tpu.dot_dimension_numbers<[1], [0], [0], [1], [0, 0, 1, 1], [], []>} : vector<16x128xf32>, vector<128x64xf32>, vector<16x64xf32> -> vector<16x64xf32>
    %c0_15 = arith.constant 0 : index
    %c0_16 = arith.constant 0 : index
    %17 = vector.load %arg7[%c0_15, %c0_16] : memref<1x64xf32, #tpu.memory_space<vmem>>, vector<1x64xf32>
    %18 = vector.broadcast %17 : vector<1x64xf32> to vector<16x64xf32>
    %19 = arith.addf %16, %18 : vector<16x64xf32>
    %cst_17 = arith.constant 0.000000e+00 : f32
    %20 = vector.broadcast %cst_17 : f32 to vector<16x64xf32>
    %21 = arith.maximumf %19, %20 : vector<16x64xf32>
    %cst_18 = arith.constant 0.000000e+00 : f32
    %22 = vector.broadcast %cst_18 : f32 to vector<16x64xf32>
    %23 = arith.subf %22, %21 : vector<16x64xf32>
    %24 = math.exp %23 : vector<16x64xf32>
    %cst_19 = arith.constant 1.000000e+00 : f32
    %25 = vector.broadcast %cst_19 : f32 to vector<16x64xf32>
    %26 = arith.addf %25, %24 : vector<16x64xf32>
    %cst_20 = arith.constant 1.000000e+00 : f32
    %27 = vector.broadcast %cst_20 : f32 to vector<16x64xf32>
    %28 = arith.divf %27, %26 : vector<16x64xf32>
    %29 = arith.mulf %21, %28 : vector<16x64xf32>
    %c0_21 = arith.constant 0 : index
    %c0_22 = arith.constant 0 : index
    %30 = vector.load %arg8[%c0_21, %c0_22] : memref<64x64xf32, #tpu.memory_space<vmem>>, vector<64x64xf32>
    %cst_23 = arith.constant dense<0.000000e+00> : vector<16x64xf32>
    %31 = tpu.matmul %29, %30, %cst_23 {dimension_numbers = #tpu.dot_dimension_numbers<[1], [0], [0], [1], [0, 0, 1, 1], [], []>} : vector<16x64xf32>, vector<64x64xf32>, vector<16x64xf32> -> vector<16x64xf32>
    %cst_24 = arith.constant -2.200000e+00 : f32
    %32 = vector.broadcast %cst_24 : f32 to vector<16x64xf32>
    %33 = arith.cmpf oge, %21, %32 : vector<16x64xf32>
    %cst_25 = arith.constant -1.800000e+00 : f32
    %34 = vector.broadcast %cst_25 : f32 to vector<16x64xf32>
    %35 = arith.cmpf olt, %21, %34 : vector<16x64xf32>
    %36 = arith.andi %33, %35 : vector<16x64xi1>
    %37 = arith.extui %36 : vector<16x64xi1> to vector<16x64xi32>
    %38 = arith.sitofp %37 : vector<16x64xi32> to vector<16x64xf32>
    %cst_26 = arith.constant -1.800000e+00 : f32
    %39 = vector.broadcast %cst_26 : f32 to vector<16x64xf32>
    %40 = arith.cmpf oge, %21, %39 : vector<16x64xf32>
    %cst_27 = arith.constant -1.400000e+00 : f32
    %41 = vector.broadcast %cst_27 : f32 to vector<16x64xf32>
    %42 = arith.cmpf olt, %21, %41 : vector<16x64xf32>
    %43 = arith.andi %40, %42 : vector<16x64xi1>
    %44 = arith.extui %43 : vector<16x64xi1> to vector<16x64xi32>
    %45 = arith.sitofp %44 : vector<16x64xi32> to vector<16x64xf32>
    %cst_28 = arith.constant -1.400000e+00 : f32
    %46 = vector.broadcast %cst_28 : f32 to vector<16x64xf32>
    %47 = arith.cmpf oge, %21, %46 : vector<16x64xf32>
    %cst_29 = arith.constant -1.000000e+00 : f32
    %48 = vector.broadcast %cst_29 : f32 to vector<16x64xf32>
    %49 = arith.cmpf olt, %21, %48 : vector<16x64xf32>
    %50 = arith.andi %47, %49 : vector<16x64xi1>
    %51 = arith.extui %50 : vector<16x64xi1> to vector<16x64xi32>
    %52 = arith.sitofp %51 : vector<16x64xi32> to vector<16x64xf32>
    %cst_30 = arith.constant -1.000000e+00 : f32
    %53 = vector.broadcast %cst_30 : f32 to vector<16x64xf32>
    %54 = arith.cmpf oge, %21, %53 : vector<16x64xf32>
    %cst_31 = arith.constant -6.000000e-01 : f32
    %55 = vector.broadcast %cst_31 : f32 to vector<16x64xf32>
    %56 = arith.cmpf olt, %21, %55 : vector<16x64xf32>
    %57 = arith.andi %54, %56 : vector<16x64xi1>
    %58 = arith.extui %57 : vector<16x64xi1> to vector<16x64xi32>
    %59 = arith.sitofp %58 : vector<16x64xi32> to vector<16x64xf32>
    %cst_32 = arith.constant -6.000000e-01 : f32
    %60 = vector.broadcast %cst_32 : f32 to vector<16x64xf32>
    %61 = arith.cmpf oge, %21, %60 : vector<16x64xf32>
    %cst_33 = arith.constant -2.000000e-01 : f32
    %62 = vector.broadcast %cst_33 : f32 to vector<16x64xf32>
    %63 = arith.cmpf olt, %21, %62 : vector<16x64xf32>
    %64 = arith.andi %61, %63 : vector<16x64xi1>
    %65 = arith.extui %64 : vector<16x64xi1> to vector<16x64xi32>
    %66 = arith.sitofp %65 : vector<16x64xi32> to vector<16x64xf32>
    %cst_34 = arith.constant -2.000000e-01 : f32
    %67 = vector.broadcast %cst_34 : f32 to vector<16x64xf32>
    %68 = arith.cmpf oge, %21, %67 : vector<16x64xf32>
    %cst_35 = arith.constant 2.000000e-01 : f32
    %69 = vector.broadcast %cst_35 : f32 to vector<16x64xf32>
    %70 = arith.cmpf olt, %21, %69 : vector<16x64xf32>
    %71 = arith.andi %68, %70 : vector<16x64xi1>
    %72 = arith.extui %71 : vector<16x64xi1> to vector<16x64xi32>
    %73 = arith.sitofp %72 : vector<16x64xi32> to vector<16x64xf32>
    %cst_36 = arith.constant 2.000000e-01 : f32
    %74 = vector.broadcast %cst_36 : f32 to vector<16x64xf32>
    %75 = arith.cmpf oge, %21, %74 : vector<16x64xf32>
    %cst_37 = arith.constant 6.000000e-01 : f32
    %76 = vector.broadcast %cst_37 : f32 to vector<16x64xf32>
    %77 = arith.cmpf olt, %21, %76 : vector<16x64xf32>
    %78 = arith.andi %75, %77 : vector<16x64xi1>
    %79 = arith.extui %78 : vector<16x64xi1> to vector<16x64xi32>
    %80 = arith.sitofp %79 : vector<16x64xi32> to vector<16x64xf32>
    %cst_38 = arith.constant 6.000000e-01 : f32
    %81 = vector.broadcast %cst_38 : f32 to vector<16x64xf32>
    %82 = arith.cmpf oge, %21, %81 : vector<16x64xf32>
    %cst_39 = arith.constant 1.000000e+00 : f32
    %83 = vector.broadcast %cst_39 : f32 to vector<16x64xf32>
    %84 = arith.cmpf olt, %21, %83 : vector<16x64xf32>
    %85 = arith.andi %82, %84 : vector<16x64xi1>
    %86 = arith.extui %85 : vector<16x64xi1> to vector<16x64xi32>
    %87 = arith.sitofp %86 : vector<16x64xi32> to vector<16x64xf32>
    %cst_40 = arith.constant 1.000000e+00 : f32
    %88 = vector.broadcast %cst_40 : f32 to vector<16x64xf32>
    %89 = arith.cmpf oge, %21, %88 : vector<16x64xf32>
    %cst_41 = arith.constant 1.400000e+00 : f32
    %90 = vector.broadcast %cst_41 : f32 to vector<16x64xf32>
    %91 = arith.cmpf olt, %21, %90 : vector<16x64xf32>
    %92 = arith.andi %89, %91 : vector<16x64xi1>
    %93 = arith.extui %92 : vector<16x64xi1> to vector<16x64xi32>
    %94 = arith.sitofp %93 : vector<16x64xi32> to vector<16x64xf32>
    %cst_42 = arith.constant 1.400000e+00 : f32
    %95 = vector.broadcast %cst_42 : f32 to vector<16x64xf32>
    %96 = arith.cmpf oge, %21, %95 : vector<16x64xf32>
    %cst_43 = arith.constant 1.800000e+00 : f32
    %97 = vector.broadcast %cst_43 : f32 to vector<16x64xf32>
    %98 = arith.cmpf olt, %21, %97 : vector<16x64xf32>
    %99 = arith.andi %96, %98 : vector<16x64xi1>
    %100 = arith.extui %99 : vector<16x64xi1> to vector<16x64xi32>
    %101 = arith.sitofp %100 : vector<16x64xi32> to vector<16x64xf32>
    %cst_44 = arith.constant 1.800000e+00 : f32
    %102 = vector.broadcast %cst_44 : f32 to vector<16x64xf32>
    %103 = arith.cmpf oge, %21, %102 : vector<16x64xf32>
    %cst_45 = arith.constant 2.200000e+00 : f32
    %104 = vector.broadcast %cst_45 : f32 to vector<16x64xf32>
    %105 = arith.cmpf olt, %21, %104 : vector<16x64xf32>
    %106 = arith.andi %103, %105 : vector<16x64xi1>
    %107 = arith.extui %106 : vector<16x64xi1> to vector<16x64xi32>
    %108 = arith.sitofp %107 : vector<16x64xi32> to vector<16x64xf32>
    %cst_46 = arith.constant -2.200000e+00 : f32
    %109 = vector.broadcast %cst_46 : f32 to vector<16x64xf32>
    %110 = arith.subf %21, %109 : vector<16x64xf32>
    %cst_47 = arith.constant 2.500000e+00 : f32
    %111 = vector.broadcast %cst_47 : f32 to vector<16x64xf32>
    %112 = arith.mulf %110, %111 : vector<16x64xf32>
    %113 = arith.mulf %112, %38 : vector<16x64xf32>
    %cst_48 = arith.constant -1.400000e+00 : f32
    %114 = vector.broadcast %cst_48 : f32 to vector<16x64xf32>
    %115 = arith.subf %114, %21 : vector<16x64xf32>
    %cst_49 = arith.constant 2.500000e+00 : f32
    %116 = vector.broadcast %cst_49 : f32 to vector<16x64xf32>
    %117 = arith.mulf %115, %116 : vector<16x64xf32>
    %118 = arith.mulf %117, %45 : vector<16x64xf32>
    %119 = arith.addf %113, %118 : vector<16x64xf32>
    %cst_50 = arith.constant -1.800000e+00 : f32
    %120 = vector.broadcast %cst_50 : f32 to vector<16x64xf32>
    %121 = arith.subf %21, %120 : vector<16x64xf32>
    %cst_51 = arith.constant 2.500000e+00 : f32
    %122 = vector.broadcast %cst_51 : f32 to vector<16x64xf32>
    %123 = arith.mulf %121, %122 : vector<16x64xf32>
    %124 = arith.mulf %123, %45 : vector<16x64xf32>
    %cst_52 = arith.constant -1.000000e+00 : f32
    %125 = vector.broadcast %cst_52 : f32 to vector<16x64xf32>
    %126 = arith.subf %125, %21 : vector<16x64xf32>
    %cst_53 = arith.constant 2.500000e+00 : f32
    %127 = vector.broadcast %cst_53 : f32 to vector<16x64xf32>
    %128 = arith.mulf %126, %127 : vector<16x64xf32>
    %129 = arith.mulf %128, %52 : vector<16x64xf32>
    %130 = arith.addf %124, %129 : vector<16x64xf32>
    %cst_54 = arith.constant -1.400000e+00 : f32
    %131 = vector.broadcast %cst_54 : f32 to vector<16x64xf32>
    %132 = arith.subf %21, %131 : vector<16x64xf32>
    %cst_55 = arith.constant 2.500000e+00 : f32
    %133 = vector.broadcast %cst_55 : f32 to vector<16x64xf32>
    %134 = arith.mulf %132, %133 : vector<16x64xf32>
    %135 = arith.mulf %134, %52 : vector<16x64xf32>
    %cst_56 = arith.constant -6.000000e-01 : f32
    %136 = vector.broadcast %cst_56 : f32 to vector<16x64xf32>
    %137 = arith.subf %136, %21 : vector<16x64xf32>
    %cst_57 = arith.constant 2.500000e+00 : f32
    %138 = vector.broadcast %cst_57 : f32 to vector<16x64xf32>
    %139 = arith.mulf %137, %138 : vector<16x64xf32>
    %140 = arith.mulf %139, %59 : vector<16x64xf32>
    %141 = arith.addf %135, %140 : vector<16x64xf32>
    %cst_58 = arith.constant -1.000000e+00 : f32
    %142 = vector.broadcast %cst_58 : f32 to vector<16x64xf32>
    %143 = arith.subf %21, %142 : vector<16x64xf32>
    %cst_59 = arith.constant 2.500000e+00 : f32
    %144 = vector.broadcast %cst_59 : f32 to vector<16x64xf32>
    %145 = arith.mulf %143, %144 : vector<16x64xf32>
    %146 = arith.mulf %145, %59 : vector<16x64xf32>
    %cst_60 = arith.constant -2.000000e-01 : f32
    %147 = vector.broadcast %cst_60 : f32 to vector<16x64xf32>
    %148 = arith.subf %147, %21 : vector<16x64xf32>
    %cst_61 = arith.constant 2.500000e+00 : f32
    %149 = vector.broadcast %cst_61 : f32 to vector<16x64xf32>
    %150 = arith.mulf %148, %149 : vector<16x64xf32>
    %151 = arith.mulf %150, %66 : vector<16x64xf32>
    %152 = arith.addf %146, %151 : vector<16x64xf32>
    %cst_62 = arith.constant -6.000000e-01 : f32
    %153 = vector.broadcast %cst_62 : f32 to vector<16x64xf32>
    %154 = arith.subf %21, %153 : vector<16x64xf32>
    %cst_63 = arith.constant 2.500000e+00 : f32
    %155 = vector.broadcast %cst_63 : f32 to vector<16x64xf32>
    %156 = arith.mulf %154, %155 : vector<16x64xf32>
    %157 = arith.mulf %156, %66 : vector<16x64xf32>
    %cst_64 = arith.constant 2.000000e-01 : f32
    %158 = vector.broadcast %cst_64 : f32 to vector<16x64xf32>
    %159 = arith.subf %158, %21 : vector<16x64xf32>
    %cst_65 = arith.constant 2.500000e+00 : f32
    %160 = vector.broadcast %cst_65 : f32 to vector<16x64xf32>
    %161 = arith.mulf %159, %160 : vector<16x64xf32>
    %162 = arith.mulf %161, %73 : vector<16x64xf32>
    %163 = arith.addf %157, %162 : vector<16x64xf32>
    %cst_66 = arith.constant -2.000000e-01 : f32
    %164 = vector.broadcast %cst_66 : f32 to vector<16x64xf32>
    %165 = arith.subf %21, %164 : vector<16x64xf32>
    %cst_67 = arith.constant 2.500000e+00 : f32
    %166 = vector.broadcast %cst_67 : f32 to vector<16x64xf32>
    %167 = arith.mulf %165, %166 : vector<16x64xf32>
    %168 = arith.mulf %167, %73 : vector<16x64xf32>
    %cst_68 = arith.constant 6.000000e-01 : f32
    %169 = vector.broadcast %cst_68 : f32 to vector<16x64xf32>
    %170 = arith.subf %169, %21 : vector<16x64xf32>
    %cst_69 = arith.constant 2.500000e+00 : f32
    %171 = vector.broadcast %cst_69 : f32 to vector<16x64xf32>
    %172 = arith.mulf %170, %171 : vector<16x64xf32>
    %173 = arith.mulf %172, %80 : vector<16x64xf32>
    %174 = arith.addf %168, %173 : vector<16x64xf32>
    %cst_70 = arith.constant 2.000000e-01 : f32
    %175 = vector.broadcast %cst_70 : f32 to vector<16x64xf32>
    %176 = arith.subf %21, %175 : vector<16x64xf32>
    %cst_71 = arith.constant 2.500000e+00 : f32
    %177 = vector.broadcast %cst_71 : f32 to vector<16x64xf32>
    %178 = arith.mulf %176, %177 : vector<16x64xf32>
    %179 = arith.mulf %178, %80 : vector<16x64xf32>
    %cst_72 = arith.constant 1.000000e+00 : f32
    %180 = vector.broadcast %cst_72 : f32 to vector<16x64xf32>
    %181 = arith.subf %180, %21 : vector<16x64xf32>
    %cst_73 = arith.constant 2.500000e+00 : f32
    %182 = vector.broadcast %cst_73 : f32 to vector<16x64xf32>
    %183 = arith.mulf %181, %182 : vector<16x64xf32>
    %184 = arith.mulf %183, %87 : vector<16x64xf32>
    %185 = arith.addf %179, %184 : vector<16x64xf32>
    %cst_74 = arith.constant 6.000000e-01 : f32
    %186 = vector.broadcast %cst_74 : f32 to vector<16x64xf32>
    %187 = arith.subf %21, %186 : vector<16x64xf32>
    %cst_75 = arith.constant 2.500000e+00 : f32
    %188 = vector.broadcast %cst_75 : f32 to vector<16x64xf32>
    %189 = arith.mulf %187, %188 : vector<16x64xf32>
    %190 = arith.mulf %189, %87 : vector<16x64xf32>
    %cst_76 = arith.constant 1.400000e+00 : f32
    %191 = vector.broadcast %cst_76 : f32 to vector<16x64xf32>
    %192 = arith.subf %191, %21 : vector<16x64xf32>
    %cst_77 = arith.constant 2.500000e+00 : f32
    %193 = vector.broadcast %cst_77 : f32 to vector<16x64xf32>
    %194 = arith.mulf %192, %193 : vector<16x64xf32>
    %195 = arith.mulf %194, %94 : vector<16x64xf32>
    %196 = arith.addf %190, %195 : vector<16x64xf32>
    %cst_78 = arith.constant 1.000000e+00 : f32
    %197 = vector.broadcast %cst_78 : f32 to vector<16x64xf32>
    %198 = arith.subf %21, %197 : vector<16x64xf32>
    %cst_79 = arith.constant 2.500000e+00 : f32
    %199 = vector.broadcast %cst_79 : f32 to vector<16x64xf32>
    %200 = arith.mulf %198, %199 : vector<16x64xf32>
    %201 = arith.mulf %200, %94 : vector<16x64xf32>
    %cst_80 = arith.constant 1.800000e+00 : f32
    %202 = vector.broadcast %cst_80 : f32 to vector<16x64xf32>
    %203 = arith.subf %202, %21 : vector<16x64xf32>
    %cst_81 = arith.constant 2.500000e+00 : f32
    %204 = vector.broadcast %cst_81 : f32 to vector<16x64xf32>
    %205 = arith.mulf %203, %204 : vector<16x64xf32>
    %206 = arith.mulf %205, %101 : vector<16x64xf32>
    %207 = arith.addf %201, %206 : vector<16x64xf32>
    %cst_82 = arith.constant 1.400000e+00 : f32
    %208 = vector.broadcast %cst_82 : f32 to vector<16x64xf32>
    %209 = arith.subf %21, %208 : vector<16x64xf32>
    %cst_83 = arith.constant 2.500000e+00 : f32
    %210 = vector.broadcast %cst_83 : f32 to vector<16x64xf32>
    %211 = arith.mulf %209, %210 : vector<16x64xf32>
    %212 = arith.mulf %211, %101 : vector<16x64xf32>
    %cst_84 = arith.constant 2.200000e+00 : f32
    %213 = vector.broadcast %cst_84 : f32 to vector<16x64xf32>
    %214 = arith.subf %213, %21 : vector<16x64xf32>
    %cst_85 = arith.constant 2.500000e+00 : f32
    %215 = vector.broadcast %cst_85 : f32 to vector<16x64xf32>
    %216 = arith.mulf %214, %215 : vector<16x64xf32>
    %217 = arith.mulf %216, %108 : vector<16x64xf32>
    %218 = arith.addf %212, %217 : vector<16x64xf32>
    %cst_86 = arith.constant -2.200000e+00 : f32
    %219 = vector.broadcast %cst_86 : f32 to vector<16x64xf32>
    %220 = arith.subf %21, %219 : vector<16x64xf32>
    %cst_87 = arith.constant 1.250000e+00 : f32
    %221 = vector.broadcast %cst_87 : f32 to vector<16x64xf32>
    %222 = arith.mulf %220, %221 : vector<16x64xf32>
    %223 = arith.mulf %222, %119 : vector<16x64xf32>
    %cst_88 = arith.constant -1.000000e+00 : f32
    %224 = vector.broadcast %cst_88 : f32 to vector<16x64xf32>
    %225 = arith.subf %224, %21 : vector<16x64xf32>
    %cst_89 = arith.constant 1.250000e+00 : f32
    %226 = vector.broadcast %cst_89 : f32 to vector<16x64xf32>
    %227 = arith.mulf %225, %226 : vector<16x64xf32>
    %228 = arith.mulf %227, %130 : vector<16x64xf32>
    %229 = arith.addf %223, %228 : vector<16x64xf32>
    %cst_90 = arith.constant -1.800000e+00 : f32
    %230 = vector.broadcast %cst_90 : f32 to vector<16x64xf32>
    %231 = arith.subf %21, %230 : vector<16x64xf32>
    %cst_91 = arith.constant 1.250000e+00 : f32
    %232 = vector.broadcast %cst_91 : f32 to vector<16x64xf32>
    %233 = arith.mulf %231, %232 : vector<16x64xf32>
    %234 = arith.mulf %233, %130 : vector<16x64xf32>
    %cst_92 = arith.constant -6.000000e-01 : f32
    %235 = vector.broadcast %cst_92 : f32 to vector<16x64xf32>
    %236 = arith.subf %235, %21 : vector<16x64xf32>
    %cst_93 = arith.constant 1.250000e+00 : f32
    %237 = vector.broadcast %cst_93 : f32 to vector<16x64xf32>
    %238 = arith.mulf %236, %237 : vector<16x64xf32>
    %239 = arith.mulf %238, %141 : vector<16x64xf32>
    %240 = arith.addf %234, %239 : vector<16x64xf32>
    %cst_94 = arith.constant -1.400000e+00 : f32
    %241 = vector.broadcast %cst_94 : f32 to vector<16x64xf32>
    %242 = arith.subf %21, %241 : vector<16x64xf32>
    %cst_95 = arith.constant 1.250000e+00 : f32
    %243 = vector.broadcast %cst_95 : f32 to vector<16x64xf32>
    %244 = arith.mulf %242, %243 : vector<16x64xf32>
    %245 = arith.mulf %244, %141 : vector<16x64xf32>
    %cst_96 = arith.constant -2.000000e-01 : f32
    %246 = vector.broadcast %cst_96 : f32 to vector<16x64xf32>
    %247 = arith.subf %246, %21 : vector<16x64xf32>
    %cst_97 = arith.constant 1.250000e+00 : f32
    %248 = vector.broadcast %cst_97 : f32 to vector<16x64xf32>
    %249 = arith.mulf %247, %248 : vector<16x64xf32>
    %250 = arith.mulf %249, %152 : vector<16x64xf32>
    %251 = arith.addf %245, %250 : vector<16x64xf32>
    %cst_98 = arith.constant -1.000000e+00 : f32
    %252 = vector.broadcast %cst_98 : f32 to vector<16x64xf32>
    %253 = arith.subf %21, %252 : vector<16x64xf32>
    %cst_99 = arith.constant 1.250000e+00 : f32
    %254 = vector.broadcast %cst_99 : f32 to vector<16x64xf32>
    %255 = arith.mulf %253, %254 : vector<16x64xf32>
    %256 = arith.mulf %255, %152 : vector<16x64xf32>
    %cst_100 = arith.constant 2.000000e-01 : f32
    %257 = vector.broadcast %cst_100 : f32 to vector<16x64xf32>
    %258 = arith.subf %257, %21 : vector<16x64xf32>
    %cst_101 = arith.constant 1.250000e+00 : f32
    %259 = vector.broadcast %cst_101 : f32 to vector<16x64xf32>
    %260 = arith.mulf %258, %259 : vector<16x64xf32>
    %261 = arith.mulf %260, %163 : vector<16x64xf32>
    %262 = arith.addf %256, %261 : vector<16x64xf32>
    %cst_102 = arith.constant -6.000000e-01 : f32
    %263 = vector.broadcast %cst_102 : f32 to vector<16x64xf32>
    %264 = arith.subf %21, %263 : vector<16x64xf32>
    %cst_103 = arith.constant 1.250000e+00 : f32
    %265 = vector.broadcast %cst_103 : f32 to vector<16x64xf32>
    %266 = arith.mulf %264, %265 : vector<16x64xf32>
    %267 = arith.mulf %266, %163 : vector<16x64xf32>
    %cst_104 = arith.constant 6.000000e-01 : f32
    %268 = vector.broadcast %cst_104 : f32 to vector<16x64xf32>
    %269 = arith.subf %268, %21 : vector<16x64xf32>
    %cst_105 = arith.constant 1.250000e+00 : f32
    %270 = vector.broadcast %cst_105 : f32 to vector<16x64xf32>
    %271 = arith.mulf %269, %270 : vector<16x64xf32>
    %272 = arith.mulf %271, %174 : vector<16x64xf32>
    %273 = arith.addf %267, %272 : vector<16x64xf32>
    %cst_106 = arith.constant -2.000000e-01 : f32
    %274 = vector.broadcast %cst_106 : f32 to vector<16x64xf32>
    %275 = arith.subf %21, %274 : vector<16x64xf32>
    %cst_107 = arith.constant 1.250000e+00 : f32
    %276 = vector.broadcast %cst_107 : f32 to vector<16x64xf32>
    %277 = arith.mulf %275, %276 : vector<16x64xf32>
    %278 = arith.mulf %277, %174 : vector<16x64xf32>
    %cst_108 = arith.constant 1.000000e+00 : f32
    %279 = vector.broadcast %cst_108 : f32 to vector<16x64xf32>
    %280 = arith.subf %279, %21 : vector<16x64xf32>
    %cst_109 = arith.constant 1.250000e+00 : f32
    %281 = vector.broadcast %cst_109 : f32 to vector<16x64xf32>
    %282 = arith.mulf %280, %281 : vector<16x64xf32>
    %283 = arith.mulf %282, %185 : vector<16x64xf32>
    %284 = arith.addf %278, %283 : vector<16x64xf32>
    %cst_110 = arith.constant 2.000000e-01 : f32
    %285 = vector.broadcast %cst_110 : f32 to vector<16x64xf32>
    %286 = arith.subf %21, %285 : vector<16x64xf32>
    %cst_111 = arith.constant 1.250000e+00 : f32
    %287 = vector.broadcast %cst_111 : f32 to vector<16x64xf32>
    %288 = arith.mulf %286, %287 : vector<16x64xf32>
    %289 = arith.mulf %288, %185 : vector<16x64xf32>
    %cst_112 = arith.constant 1.400000e+00 : f32
    %290 = vector.broadcast %cst_112 : f32 to vector<16x64xf32>
    %291 = arith.subf %290, %21 : vector<16x64xf32>
    %cst_113 = arith.constant 1.250000e+00 : f32
    %292 = vector.broadcast %cst_113 : f32 to vector<16x64xf32>
    %293 = arith.mulf %291, %292 : vector<16x64xf32>
    %294 = arith.mulf %293, %196 : vector<16x64xf32>
    %295 = arith.addf %289, %294 : vector<16x64xf32>
    %cst_114 = arith.constant 6.000000e-01 : f32
    %296 = vector.broadcast %cst_114 : f32 to vector<16x64xf32>
    %297 = arith.subf %21, %296 : vector<16x64xf32>
    %cst_115 = arith.constant 1.250000e+00 : f32
    %298 = vector.broadcast %cst_115 : f32 to vector<16x64xf32>
    %299 = arith.mulf %297, %298 : vector<16x64xf32>
    %300 = arith.mulf %299, %196 : vector<16x64xf32>
    %cst_116 = arith.constant 1.800000e+00 : f32
    %301 = vector.broadcast %cst_116 : f32 to vector<16x64xf32>
    %302 = arith.subf %301, %21 : vector<16x64xf32>
    %cst_117 = arith.constant 1.250000e+00 : f32
    %303 = vector.broadcast %cst_117 : f32 to vector<16x64xf32>
    %304 = arith.mulf %302, %303 : vector<16x64xf32>
    %305 = arith.mulf %304, %207 : vector<16x64xf32>
    %306 = arith.addf %300, %305 : vector<16x64xf32>
    %cst_118 = arith.constant 1.000000e+00 : f32
    %307 = vector.broadcast %cst_118 : f32 to vector<16x64xf32>
    %308 = arith.subf %21, %307 : vector<16x64xf32>
    %cst_119 = arith.constant 1.250000e+00 : f32
    %309 = vector.broadcast %cst_119 : f32 to vector<16x64xf32>
    %310 = arith.mulf %308, %309 : vector<16x64xf32>
    %311 = arith.mulf %310, %207 : vector<16x64xf32>
    %cst_120 = arith.constant 2.200000e+00 : f32
    %312 = vector.broadcast %cst_120 : f32 to vector<16x64xf32>
    %313 = arith.subf %312, %21 : vector<16x64xf32>
    %cst_121 = arith.constant 1.250000e+00 : f32
    %314 = vector.broadcast %cst_121 : f32 to vector<16x64xf32>
    %315 = arith.mulf %313, %314 : vector<16x64xf32>
    %316 = arith.mulf %315, %218 : vector<16x64xf32>
    %317 = arith.addf %311, %316 : vector<16x64xf32>
    %cst_122 = arith.constant -2.200000e+00 : f32
    %318 = vector.broadcast %cst_122 : f32 to vector<16x64xf32>
    %319 = arith.subf %21, %318 : vector<16x64xf32>
    %cst_123 = arith.constant 0.833333313 : f32
    %320 = vector.broadcast %cst_123 : f32 to vector<16x64xf32>
    %321 = arith.mulf %319, %320 : vector<16x64xf32>
    %322 = arith.mulf %321, %229 : vector<16x64xf32>
    %cst_124 = arith.constant -6.000000e-01 : f32
    %323 = vector.broadcast %cst_124 : f32 to vector<16x64xf32>
    %324 = arith.subf %323, %21 : vector<16x64xf32>
    %cst_125 = arith.constant 0.833333313 : f32
    %325 = vector.broadcast %cst_125 : f32 to vector<16x64xf32>
    %326 = arith.mulf %324, %325 : vector<16x64xf32>
    %327 = arith.mulf %326, %240 : vector<16x64xf32>
    %328 = arith.addf %322, %327 : vector<16x64xf32>
    %cst_126 = arith.constant -1.800000e+00 : f32
    %329 = vector.broadcast %cst_126 : f32 to vector<16x64xf32>
    %330 = arith.subf %21, %329 : vector<16x64xf32>
    %cst_127 = arith.constant 0.833333313 : f32
    %331 = vector.broadcast %cst_127 : f32 to vector<16x64xf32>
    %332 = arith.mulf %330, %331 : vector<16x64xf32>
    %333 = arith.mulf %332, %240 : vector<16x64xf32>
    %cst_128 = arith.constant -2.000000e-01 : f32
    %334 = vector.broadcast %cst_128 : f32 to vector<16x64xf32>
    %335 = arith.subf %334, %21 : vector<16x64xf32>
    %cst_129 = arith.constant 0.833333313 : f32
    %336 = vector.broadcast %cst_129 : f32 to vector<16x64xf32>
    %337 = arith.mulf %335, %336 : vector<16x64xf32>
    %338 = arith.mulf %337, %251 : vector<16x64xf32>
    %339 = arith.addf %333, %338 : vector<16x64xf32>
    %cst_130 = arith.constant -1.400000e+00 : f32
    %340 = vector.broadcast %cst_130 : f32 to vector<16x64xf32>
    %341 = arith.subf %21, %340 : vector<16x64xf32>
    %cst_131 = arith.constant 0.833333313 : f32
    %342 = vector.broadcast %cst_131 : f32 to vector<16x64xf32>
    %343 = arith.mulf %341, %342 : vector<16x64xf32>
    %344 = arith.mulf %343, %251 : vector<16x64xf32>
    %cst_132 = arith.constant 2.000000e-01 : f32
    %345 = vector.broadcast %cst_132 : f32 to vector<16x64xf32>
    %346 = arith.subf %345, %21 : vector<16x64xf32>
    %cst_133 = arith.constant 0.833333313 : f32
    %347 = vector.broadcast %cst_133 : f32 to vector<16x64xf32>
    %348 = arith.mulf %346, %347 : vector<16x64xf32>
    %349 = arith.mulf %348, %262 : vector<16x64xf32>
    %350 = arith.addf %344, %349 : vector<16x64xf32>
    %cst_134 = arith.constant -1.000000e+00 : f32
    %351 = vector.broadcast %cst_134 : f32 to vector<16x64xf32>
    %352 = arith.subf %21, %351 : vector<16x64xf32>
    %cst_135 = arith.constant 0.833333313 : f32
    %353 = vector.broadcast %cst_135 : f32 to vector<16x64xf32>
    %354 = arith.mulf %352, %353 : vector<16x64xf32>
    %355 = arith.mulf %354, %262 : vector<16x64xf32>
    %cst_136 = arith.constant 6.000000e-01 : f32
    %356 = vector.broadcast %cst_136 : f32 to vector<16x64xf32>
    %357 = arith.subf %356, %21 : vector<16x64xf32>
    %cst_137 = arith.constant 0.833333313 : f32
    %358 = vector.broadcast %cst_137 : f32 to vector<16x64xf32>
    %359 = arith.mulf %357, %358 : vector<16x64xf32>
    %360 = arith.mulf %359, %273 : vector<16x64xf32>
    %361 = arith.addf %355, %360 : vector<16x64xf32>
    %cst_138 = arith.constant -6.000000e-01 : f32
    %362 = vector.broadcast %cst_138 : f32 to vector<16x64xf32>
    %363 = arith.subf %21, %362 : vector<16x64xf32>
    %cst_139 = arith.constant 0.833333313 : f32
    %364 = vector.broadcast %cst_139 : f32 to vector<16x64xf32>
    %365 = arith.mulf %363, %364 : vector<16x64xf32>
    %366 = arith.mulf %365, %273 : vector<16x64xf32>
    %cst_140 = arith.constant 1.000000e+00 : f32
    %367 = vector.broadcast %cst_140 : f32 to vector<16x64xf32>
    %368 = arith.subf %367, %21 : vector<16x64xf32>
    %cst_141 = arith.constant 0.833333313 : f32
    %369 = vector.broadcast %cst_141 : f32 to vector<16x64xf32>
    %370 = arith.mulf %368, %369 : vector<16x64xf32>
    %371 = arith.mulf %370, %284 : vector<16x64xf32>
    %372 = arith.addf %366, %371 : vector<16x64xf32>
    %cst_142 = arith.constant -2.000000e-01 : f32
    %373 = vector.broadcast %cst_142 : f32 to vector<16x64xf32>
    %374 = arith.subf %21, %373 : vector<16x64xf32>
    %cst_143 = arith.constant 0.833333313 : f32
    %375 = vector.broadcast %cst_143 : f32 to vector<16x64xf32>
    %376 = arith.mulf %374, %375 : vector<16x64xf32>
    %377 = arith.mulf %376, %284 : vector<16x64xf32>
    %cst_144 = arith.constant 1.400000e+00 : f32
    %378 = vector.broadcast %cst_144 : f32 to vector<16x64xf32>
    %379 = arith.subf %378, %21 : vector<16x64xf32>
    %cst_145 = arith.constant 0.833333313 : f32
    %380 = vector.broadcast %cst_145 : f32 to vector<16x64xf32>
    %381 = arith.mulf %379, %380 : vector<16x64xf32>
    %382 = arith.mulf %381, %295 : vector<16x64xf32>
    %383 = arith.addf %377, %382 : vector<16x64xf32>
    %cst_146 = arith.constant 2.000000e-01 : f32
    %384 = vector.broadcast %cst_146 : f32 to vector<16x64xf32>
    %385 = arith.subf %21, %384 : vector<16x64xf32>
    %cst_147 = arith.constant 0.833333313 : f32
    %386 = vector.broadcast %cst_147 : f32 to vector<16x64xf32>
    %387 = arith.mulf %385, %386 : vector<16x64xf32>
    %388 = arith.mulf %387, %295 : vector<16x64xf32>
    %cst_148 = arith.constant 1.800000e+00 : f32
    %389 = vector.broadcast %cst_148 : f32 to vector<16x64xf32>
    %390 = arith.subf %389, %21 : vector<16x64xf32>
    %cst_149 = arith.constant 0.833333313 : f32
    %391 = vector.broadcast %cst_149 : f32 to vector<16x64xf32>
    %392 = arith.mulf %390, %391 : vector<16x64xf32>
    %393 = arith.mulf %392, %306 : vector<16x64xf32>
    %394 = arith.addf %388, %393 : vector<16x64xf32>
    %cst_150 = arith.constant 6.000000e-01 : f32
    %395 = vector.broadcast %cst_150 : f32 to vector<16x64xf32>
    %396 = arith.subf %21, %395 : vector<16x64xf32>
    %cst_151 = arith.constant 0.833333313 : f32
    %397 = vector.broadcast %cst_151 : f32 to vector<16x64xf32>
    %398 = arith.mulf %396, %397 : vector<16x64xf32>
    %399 = arith.mulf %398, %306 : vector<16x64xf32>
    %cst_152 = arith.constant 2.200000e+00 : f32
    %400 = vector.broadcast %cst_152 : f32 to vector<16x64xf32>
    %401 = arith.subf %400, %21 : vector<16x64xf32>
    %cst_153 = arith.constant 0.833333313 : f32
    %402 = vector.broadcast %cst_153 : f32 to vector<16x64xf32>
    %403 = arith.mulf %401, %402 : vector<16x64xf32>
    %404 = arith.mulf %403, %317 : vector<16x64xf32>
    %405 = arith.addf %399, %404 : vector<16x64xf32>
    %406 = tpu.concatenate %328, %339, %350, %361, %372, %383, %394, %405 in 1 : vector<16x64xf32>, vector<16x64xf32>, vector<16x64xf32>, vector<16x64xf32>, vector<16x64xf32>, vector<16x64xf32>, vector<16x64xf32>, vector<16x64xf32> -> vector<16x512xf32>
    %c0_154 = arith.constant 0 : index
    %c0_155 = arith.constant 0 : index
    %407 = vector.load %arg9[%c0_154, %c0_155] : memref<512x64xf32, #tpu.memory_space<vmem>>, vector<512x64xf32>
    %cst_156 = arith.constant dense<0.000000e+00> : vector<16x64xf32>
    %408 = tpu.matmul %406, %407, %cst_156 {dimension_numbers = #tpu.dot_dimension_numbers<[1], [0], [0], [1], [0, 0, 1, 1], [], []>} : vector<16x512xf32>, vector<512x64xf32>, vector<16x64xf32> -> vector<16x64xf32>
    %409 = arith.addf %31, %408 : vector<16x64xf32>
    %c0_157 = arith.constant 0 : index
    %c0_158 = arith.constant 0 : index
    %410 = vector.load %arg10[%c0_157, %c0_158] : memref<64x32xf32, #tpu.memory_space<vmem>>, vector<64x32xf32>
    %cst_159 = arith.constant dense<0.000000e+00> : vector<16x32xf32>
    %411 = tpu.matmul %409, %410, %cst_159 {dimension_numbers = #tpu.dot_dimension_numbers<[1], [0], [0], [1], [0, 0, 1, 1], [], []>} : vector<16x64xf32>, vector<64x32xf32>, vector<16x32xf32> -> vector<16x32xf32>
    %c0_160 = arith.constant 0 : index
    %c0_161 = arith.constant 0 : index
    %412 = vector.load %arg11[%c0_160, %c0_161] : memref<1x32xf32, #tpu.memory_space<vmem>>, vector<1x32xf32>
    %413 = vector.broadcast %412 : vector<1x32xf32> to vector<16x32xf32>
    %414 = arith.addf %411, %413 : vector<16x32xf32>
    %cst_162 = arith.constant 0.000000e+00 : f32
    %415 = vector.broadcast %cst_162 : f32 to vector<16x32xf32>
    %416 = arith.maximumf %414, %415 : vector<16x32xf32>
    %c0_163 = arith.constant 0 : index
    %c0_164 = arith.constant 0 : index
    %417 = vector.load %arg12[%c0_163, %c0_164] : memref<32x16xf32, #tpu.memory_space<vmem>>, vector<32x16xf32>
    %cst_165 = arith.constant dense<0.000000e+00> : vector<16x16xf32>
    %418 = tpu.matmul %416, %417, %cst_165 {dimension_numbers = #tpu.dot_dimension_numbers<[1], [0], [0], [1], [0, 0, 1, 1], [], []>} : vector<16x32xf32>, vector<32x16xf32>, vector<16x16xf32> -> vector<16x16xf32>
    %c0_166 = arith.constant 0 : index
    %c0_167 = arith.constant 0 : index
    %419 = vector.load %arg13[%c0_166, %c0_167] : memref<1x16xf32, #tpu.memory_space<vmem>>, vector<1x16xf32>
    %420 = vector.broadcast %419 : vector<1x16xf32> to vector<16x16xf32>
    %421 = arith.addf %418, %420 : vector<16x16xf32>
    %cst_168 = arith.constant 0.000000e+00 : f32
    %422 = vector.broadcast %cst_168 : f32 to vector<16x16xf32>
    %423 = arith.maximumf %421, %422 : vector<16x16xf32>
    %c0_169 = arith.constant 0 : index
    %c0_170 = arith.constant 0 : index
    %424 = vector.load %arg14[%c0_169, %c0_170] : memref<16x128xf32, #tpu.memory_space<vmem>>, vector<16x128xf32>
    %cst_171 = arith.constant dense<0.000000e+00> : vector<16x128xf32>
    %425 = tpu.matmul %423, %424, %cst_171 {dimension_numbers = #tpu.dot_dimension_numbers<[1], [0], [0], [1], [0, 0, 1, 1], [], []>} : vector<16x16xf32>, vector<16x128xf32>, vector<16x128xf32> -> vector<16x128xf32>
    %c0_172 = arith.constant 0 : index
    %c0_173 = arith.constant 0 : index
    %426 = vector.load %arg15[%c0_172, %c0_173] : memref<1x128xf32, #tpu.memory_space<vmem>>, vector<1x128xf32>
    %427 = vector.broadcast %426 : vector<1x128xf32> to vector<16x128xf32>
    %428 = arith.addf %425, %427 : vector<16x128xf32>
    %c0_174 = arith.constant 0 : index
    %c0_175 = arith.constant 0 : index
    %429 = vector.load %arg16[%c0_174, %c0_175] : memref<16x128xf32, #tpu.memory_space<vmem>>, vector<16x128xf32>
    tpu.vector_store %arg16[%c0_174, %c0_175], %428 {strides = array<i32>} : memref<16x128xf32, #tpu.memory_space<vmem>>, vector<16x128xf32>,
    return
  }
  func.func @transform_0(%arg0: i32) -> (i32, i32) {
    %c0_i32 = arith.constant 0 : i32
    %c0_i32_0 = arith.constant 0 : i32
    return %arg0, %c0_i32 : i32, i32
  }
  func.func @transform_1(%arg0: i32) -> (i32, i32) {
    %c0_i32 = arith.constant 0 : i32
    %c0_i32_0 = arith.constant 0 : i32
    %c0_i32_1 = arith.constant 0 : i32
    return %c0_i32, %c0_i32_0 : i32, i32
  }
  func.func @transform_2(%arg0: i32) -> (i32, i32) {
    %c0_i32 = arith.constant 0 : i32
    %c0_i32_0 = arith.constant 0 : i32
    %c0_i32_1 = arith.constant 0 : i32
    return %c0_i32, %c0_i32_0 : i32, i32
  }
  func.func @transform_3(%arg0: i32) -> (i32, i32) {
    %c0_i32 = arith.constant 0 : i32
    %c0_i32_0 = arith.constant 0 : i32
    %c0_i32_1 = arith.constant 0 : i32
    return %c0_i32, %c0_i32_0 : i32, i32
  }
  func.func @transform_4(%arg0: i32) -> (i32, i32) {
    %c0_i32 = arith.constant 0 : i32
    %c0_i32_0 = arith.constant 0 : i32
    %c0_i32_1 = arith.constant 0 : i32
    return %c0_i32, %c0_i32_0 : i32, i32
  }
  func.func @transform_5(%arg0: i32) -> (i32, i32) {
    %c0_i32 = arith.constant 0 : i32
    %c0_i32_0 = arith.constant 0 : i32
    %c0_i32_1 = arith.constant 0 : i32
    return %c0_i32, %c0_i32_0 : i32, i32
  }
  func.func @transform_6(%arg0: i32) -> (i32, i32) {
    %c0_i32 = arith.constant 0 : i32
    %c0_i32_0 = arith.constant 0 : i32
    %c0_i32_1 = arith.constant 0 : i32
    return %c0_i32, %c0_i32_0 : i32, i32
  }
  func.func @transform_7(%arg0: i32) -> (i32, i32) {
    %c0_i32 = arith.constant 0 : i32
    %c0_i32_0 = arith.constant 0 : i32
    %c0_i32_1 = arith.constant 0 : i32
    return %c0_i32, %c0_i32_0 : i32, i32
  }
  func.func @transform_8(%arg0: i32) -> (i32, i32) {
    %c0_i32 = arith.constant 0 : i32
    %c0_i32_0 = arith.constant 0 : i32
    %c0_i32_1 = arith.constant 0 : i32
    return %c0_i32, %c0_i32_0 : i32, i32
  }
  func.func @transform_9(%arg0: i32) -> (i32, i32) {
    %c0_i32 = arith.constant 0 : i32
    %c0_i32_0 = arith.constant 0 : i32
    %c0_i32_1 = arith.constant 0 : i32
    return %c0_i32, %c0_i32_0 : i32, i32
  }
  func.func @transform_10(%arg0: i32) -> (i32, i32) {
    %c0_i32 = arith.constant 0 : i32
    %c0_i32_0 = arith.constant 0 : i32
    %c0_i32_1 = arith.constant 0 : i32
    return %c0_i32, %c0_i32_0 : i32, i32
  }
  func.func @transform_11(%arg0: i32) -> (i32, i32) {
    %c0_i32 = arith.constant 0 : i32
    %c0_i32_0 = arith.constant 0 : i32
    %c0_i32_1 = arith.constant 0 : i32
    return %c0_i32, %c0_i32_0 : i32, i32
  }
  func.func @transform_12(%arg0: i32) -> (i32, i32) {
    %c0_i32 = arith.constant 0 : i32
    %c0_i32_0 = arith.constant 0 : i32
    %c0_i32_1 = arith.constant 0 : i32
    return %c0_i32, %c0_i32_0 : i32, i32
  }
  func.func @transform_13(%arg0: i32) -> (i32, i32) {
    %c0_i32 = arith.constant 0 : i32
    %c0_i32_0 = arith.constant 0 : i32
    %c0_i32_1 = arith.constant 0 : i32
    return %c0_i32, %c0_i32_0 : i32, i32
  }
  func.func @transform_14(%arg0: i32) -> (i32, i32) {
    %c0_i32 = arith.constant 0 : i32
    %c0_i32_0 = arith.constant 0 : i32
    %c0_i32_1 = arith.constant 0 : i32
    return %c0_i32, %c0_i32_0 : i32, i32
  }
  func.func @transform_15(%arg0: i32) -> (i32, i32) {
    %c0_i32 = arith.constant 0 : i32
    %c0_i32_0 = arith.constant 0 : i32
    return %arg0, %c0_i32 : i32, i32
  }
}

</mosaic_0001>

<bundles_post_ra>
// kernel: tpu_custom_call.1
= control target key start
LH: loop header
LB: loop body
LE: loop exit
PB: predicated region body
PF: predicated region fallthrough
CT: control target
= control target key end

     0   :  { %v2019_v7 = vmov 0.0   ;;  %s2917_s0 = inlined_call_operand.vmem [shape: f32[16,64], index: 0, kind: input, shape index: {}]   ;;  %s2918_s1 = inlined_call_operand.vmem [shape: f32[64,256], index: 1, kind: input, shape index: {}]   ;;  %s2919_s2 = inlined_call_operand.vmem [shape: f32[1,256], index: 2, kind: input, shape index: {}]   ;;  %s2920_s3 = inlined_call_operand.vmem [shape: f32[256,128], index: 3, kind: input, shape index: {}]   ;;  %s2921_s4 = inlined_call_operand.vmem [shape: f32[1,128], index: 4, kind: input, shape index: {}]   ;;  %s2922_s5 = inlined_call_operand.vmem [shape: f32[128,64], index: 5, kind: input, shape index: {}]   ;;  %s2923_s6 = inlined_call_operand.vmem [shape: f32[1,64], index: 6, kind: input, shape index: {}]   ;;  %s2924_s7 = inlined_call_operand.vmem [shape: f32[64,64], index: 7, kind: input, shape index: {}]   ;;  %s2925_s8 = inlined_call_operand.vmem [shape: f32[512,64], index: 8, kind: input, shape index: {}]   ;;  %s2926_s9 = inlined_call_operand.vmem [shape: f32[64,32], index: 9, kind: input, shape index: {}]   ;;  %s2927_s10 = inlined_call_operand.vmem [shape: f32[1,32], index: 10, kind: input, shape index: {}]   ;;  %s2928_s11 = inlined_call_operand.vmem [shape: f32[32,16], index: 11, kind: input, shape index: {}]   ;;  %s2929_s12 = inlined_call_operand.vmem [shape: f32[1,16], index: 12, kind: input, shape index: {}]   ;;  %s2930_s13 = inlined_call_operand.vmem [shape: f32[16,128], index: 13, kind: input, shape index: {}]   ;;  %s2931_s14 = inlined_call_operand.vmem [shape: f32[1,128], index: 14, kind: input, shape index: {}]   ;;  %s2932_s15 = inlined_call_operand.hbm [shape: f32[16,128], index: 15, kind: output, shape index: {}]  }
   0x1   :  { %v54_v0 = vld [vmem:[%s2918_s1 + $0x8] sm:$0xff]  ;;  %v56_v1 = vld [vmem:[%s2918_s1 + $0x18] sm:$0xff]  ;;  %v53_v2 = vld [vmem:[%s2918_s1] sm:$0xff]  ;;  %152 = vmatprep.mubr.f32.mxu0 %v2019_v7 }
   0x2   :  { %v1774_v3 = vpack.c.bf16 %v56_v1, %v54_v0  ;;  %v55_v4 = vld [vmem:[%s2918_s1 + $0x10] sm:$0xff]  ;;  %v58_v5 = vld [vmem:[%s2918_s1 + $0x28] sm:$0xff]  ;;  %v60_v6 = vld [vmem:[%s2918_s1 + $0x38] sm:$0xff] }
   0x3   :  { %v1776_v8 = vpack.c.bf16 %v55_v4, %v53_v2  ;;  %v1778_v9 = vpack.c.bf16 %v60_v6, %v58_v5  ;;  %v57_v10 = vld [vmem:[%s2918_s1 + $0x20] sm:$0xff]  ;;  %v59_v11 = vld [vmem:[%s2918_s1 + $0x30] sm:$0xff]  ;;  %v62_v12 = vld [vmem:[%s2918_s1 + $0x48] sm:$0xff] }
   0x4   :  { %1775 = vmatprep.subr.bf16.mxu0 %v1774_v3  ;;  %v64_v13 = vld [vmem:[%s2918_s1 + $0x58] sm:$0xff]  ;;  %v1780_v14 = vpack.c.bf16 %v59_v11, %v57_v10  ;;  %v61_v15 = vld [vmem:[%s2918_s1 + $0x40] sm:$0xff]  ;;  %v63_v17 = vld [vmem:[%s2918_s1 + $0x50] sm:$0xff] }
   0x5   :  { %1777 = vmatpush1.bf16.msra.mxu0 %v1776_v8  ;;  %v1782_v16 = vpack.c.bf16 %v64_v13, %v62_v12  ;;  %v66_v18 = vld [vmem:[%s2918_s1 + $0x68] sm:$0xff]  ;;  %v68_v19 = vld [vmem:[%s2918_s1 + $0x78] sm:$0xff]  ;;  %v185_v20 = vld [vmem:[%s2920_s3 + $0x80] sm:$0xff]  ;;  %v1784_v27 = vpack.c.bf16 %v63_v17, %v61_v15 }
   0x6   :  { %1779 = vmatprep.subr.bf16.mxu0 %v1778_v9  ;;  %v186_v21 = vld [vmem:[%s2920_s3 + $0x88] sm:$0xff]  ;;  %v169_v22 = vld [vmem:[%s2920_s3] sm:$0xff]  ;;  %v187_v25 = vld [vmem:[%s2920_s3 + $0x90] sm:$0xff]  ;;  %v1786_v33 = vpack.c.bf16 %v68_v19, %v66_v18 }
   0x7   :  { %v1790_v23 = vpack.c.bf16 %v186_v21, %v185_v20  ;;  %v170_v24 = vld [vmem:[%s2920_s3 + $0x8] sm:$0xff]  ;;  %v188_v26 = vld [vmem:[%s2920_s3 + $0x98] sm:$0xff]  ;;  %v171_v30 = vld [vmem:[%s2920_s3 + $0x10] sm:$0xff] }
   0x8   :  { %v1792_v28 = vpack.c.bf16 %v170_v24, %v169_v22  ;;  %v1794_v29 = vpack.c.bf16 %v188_v26, %v187_v25  ;;  %v172_v31 = vld [vmem:[%s2920_s3 + $0x18] sm:$0xff]  ;;  %v189_v32 = vld [vmem:[%s2920_s3 + $0xa0] sm:$0xff]  ;;  %v67_v35 = vld [vmem:[%s2918_s1 + $0x70] sm:$0xff] }
   0x9   :  { %1781 = vmatpush1.bf16.msra.mxu0 %v1780_v14  ;;  %v65_v34 = vld [vmem:[%s2918_s1 + $0x60] sm:$0xff]  ;;  %1791 = vmatprep.subr.bf16.mxu1 %v1790_v23  ;;  %v190_v36 = vld [vmem:[%s2920_s3 + $0xa8] sm:$0xff]  ;;  %v1796_v37 = vpack.c.bf16 %v172_v31, %v171_v30  ;;  %v191_v42 = vld [vmem:[%s2920_s3 + $0xb0] sm:$0xff] }
   0xa   :  { %1783 = vmatprep.subr.bf16.mxu0 %v1782_v16  ;;  %1793 = vmatpush3.bf16.msra.mxu1 %v1792_v28  ;;  %v1798_v38 = vpack.c.bf16 %v190_v36, %v189_v32  ;;  %v173_v39 = vld [vmem:[%s2920_s3 + $0x20] sm:$0xff]  ;;  %v174_v40 = vld [vmem:[%s2920_s3 + $0x28] sm:$0xff]  ;;  %v1788_v41 = vpack.c.bf16 %v67_v35, %v65_v34  ;;  %v192_v43 = vld [vmem:[%s2920_s3 + $0xb8] sm:$0xff] }
   0xb   :  { %1795 = vmatprep.subr.bf16.mxu1 %v1794_v29  ;;  %v1800_v44 = vpack.c.bf16 %v174_v40, %v173_v39  ;;  %v1802_v45 = vpack.c.bf16 %v192_v43, %v191_v42  ;;  %v175_v46 = vld [vmem:[%s2920_s3 + $0x30] sm:$0xff]  ;;  %v176_v47 = vld [vmem:[%s2920_s3 + $0x38] sm:$0xff] }
   0xd   :  { %1785 = vmatpush1.bf16.msra.mxu0 %v1784_v27 }
   0xe   :  { %1787 = vmatprep.subr.bf16.mxu0 %v1786_v33  ;;  %1797 = vmatpush3.bf16.msra.mxu1 %v1796_v37 }
   0xf   :  { %1799 = vmatprep.subr.bf16.mxu1 %v1798_v38 }
  0x10   :  { %20 = vsyncpa [#allocation3], 0  ;;  %v51_v48 = vld [vmem:[%s2917_s0] sm:$0xff]  ;;  %vm81_vm0 = vcmask 523264   ;;  %v194_v50 = vld [vmem:[%s2920_s3 + $0xc8] sm:$0xff]  ;;  %v1804_v51 = vpack.c.bf16 %v176_v47, %v175_v46  ;;  %v71_v27 = vlaneseq }
  0x11   :  { %1789 = vmatpush1.bf16.msra.mxu0 %v1788_v41  ;;  %v193_v49 = vld [vmem:[%s2920_s3 + $0xc0] sm:$0xff]  ;;  %v178_v54 = vld [vmem:[%s2920_s3 + $0x48] sm:$0xff]  ;;  %v195_v56 = vld [vmem:[%s2920_s3 + $0xd0] sm:$0xff] }
  0x12   :  { %1801 = vmatpush3.bf16.msra.mxu1 %v1800_v44  ;;  %v1806_v52 = vpack.c.bf16 %v194_v50, %v193_v49  ;;  %v177_v53 = vld [vmem:[%s2920_s3 + $0x40] sm:$0xff]  ;;  %v52_v55 = vld [vmem:[%s2917_s0 + $0x8] sm:$0xff]  ;;  %v196_v57 = vld [vmem:[%s2920_s3 + $0xd8] sm:$0xff]  ;;  %v72_v28 = vshrl.u32 %v71_v27, 7 }
  0x13   :  { %1803 = vmatprep.subr.bf16.mxu1 %v1802_v45  ;;  %v1808_v58 = vpack.c.bf16 %v178_v54, %v177_v53  ;;  %v1810_v59 = vpack.c.bf16 %v196_v57, %v195_v56  ;;  %v179_v60 = vld [vmem:[%s2920_s3 + $0x50] sm:$0xff]  ;;  %v180_v61 = vld [vmem:[%s2920_s3 + $0x58] sm:$0xff]  ;;  %v197_v62 = vld [vmem:[%s2920_s3 + $0xe0] sm:$0xff] }
  0x14   :  { %1464 = vmatmul.mubr.msk.f32.vlgmr.msra.gmra.mrb[0].mxu0 %vm81_vm0, %v51_v48  ;;  %v198_v63 = vld [vmem:[%s2920_s3 + $0xe8] sm:$0xff]  ;;  %v1812_v0 = vpack.c.bf16 %v180_v61, %v179_v60  ;;  %v181_v2 = vld [vmem:[%s2920_s3 + $0x60] sm:$0xff]  ;;  %v199_v5 = vld [vmem:[%s2920_s3 + $0xf0] sm:$0xff]  ;;  %v73_v29 = vsub.s32 0, %v72_v28  ;;  %v77_v31 = vsub.s32 1, %v72_v28 }
  0x15   :  { %158 = vmatprep.mubr.f32.mxu0 %v2019_v7  ;;  %v1814_v1 = vpack.c.bf16 %v198_v63, %v197_v62  ;;  %v182_v3 = vld [vmem:[%s2920_s3 + $0x68] sm:$0xff]  ;;  %v200_v6 = vld [vmem:[%s2920_s3 + $0xf8] sm:$0xff]  ;;  %v183_v9 = vld [vmem:[%s2920_s3 + $0x70] sm:$0xff] }
  0x16   :  { %1805 = vmatpush3.bf16.msra.mxu1 %v1804_v51  ;;  %v1816_v4 = vpack.c.bf16 %v182_v3, %v181_v2  ;;  %v1818_v8 = vpack.c.bf16 %v200_v6, %v199_v5  ;;  %v184_v10 = vld [vmem:[%s2920_s3 + $0x78] sm:$0xff]  ;;  %v285_v12 = vld [vmem:[%s2922_s5] sm:$0xff]  ;;  %v286_v13 = vld [vmem:[%s2922_s5 + $0x8] sm:$0xff] }
  0x17   :  { %1807 = vmatprep.subr.bf16.mxu1 %v1806_v52  ;;  %v1820_v11 = vpack.c.bf16 %v184_v10, %v183_v9  ;;  %v287_v14 = vld [vmem:[%s2922_s5 + $0x10] sm:$0xff]  ;;  %v1822_v15 = vpack.c.bf16 %v286_v13, %v285_v12  ;;  %v288_v16 = vld [vmem:[%s2922_s5 + $0x18] sm:$0xff]  ;;  %v289_v18 = vld [vmem:[%s2922_s5 + $0x20] sm:$0xff] }
  0x18   :  { %1465 = vmatmul.mubr.msk.f32.gmra.mrb[2].mxu0 %vm81_vm0, %v52_v55  ;;  %v1826_v17 = vpack.c.bf16 %v288_v16, %v287_v14  ;;  %v290_v19 = vld [vmem:[%s2922_s5 + $0x28] sm:$0xff]  ;;  %v291_v21 = vld [vmem:[%s2922_s5 + $0x30] sm:$0xff]  ;;  %v292_v22 = vld [vmem:[%s2922_s5 + $0x38] sm:$0xff] }
  0x19   :  { %1823 = vmatprep.subr.bf16.mxu0 %v1822_v15  ;;  %v1830_v20 = vpack.c.bf16 %v290_v19, %v289_v18  ;;  %v1834_v23 = vpack.c.bf16 %v292_v22, %v291_v21  ;;  %v293_v24 = vld [vmem:[%s2922_s5 + $0x40] sm:$0xff]  ;;  %v294_v25 = vld [vmem:[%s2922_s5 + $0x48] sm:$0xff]  ;;  %v295_v46 = vld [vmem:[%s2922_s5 + $0x50] sm:$0xff] }
  0x1a   :  { %1809 = vmatpush3.bf16.msra.mxu1 %v1808_v58  ;;  %1825 = vmatpush3.bf16.msra.mxu0 %v1822_v15  ;;  %v1838_v26 = vpack.c.bf16 %v294_v25, %v293_v24  ;;  %v69_v30 = vld [vmem:[%s2919_s2] sm:$0x3]  ;;  %v296_v47 = vld [vmem:[%s2922_s5 + $0x58] sm:$0xff]  ;;  %v298_v50 = vld [vmem:[%s2922_s5 + $0x68] sm:$0xff] }
  0x1b   :  { %1811 = vmatprep.subr.bf16.mxu1 %v1810_v59  ;;  %1827 = vmatprep.subr.bf16.mxu0 %v1826_v17  ;;  %v74_v32 = vrot.slane %v69_v30, %v73_v29  ;;  %v78_v33 = vrot.slane %v69_v30, %v77_v31  ;;  %v1842_v48 = vpack.c.bf16 %v296_v47, %v295_v46  ;;  %v297_v49 = vld [vmem:[%s2922_s5 + $0x60] sm:$0xff]  ;;  %v299_v52 = vld [vmem:[%s2922_s5 + $0x70] sm:$0xff]  ;;  %v300_v53 = vld [vmem:[%s2922_s5 + $0x78] sm:$0xff] }
  0x1c   :  { %v1846_v51 = vpack.c.bf16 %v298_v50, %v297_v49  ;;  %v1850_v54 = vpack.c.bf16 %v300_v53, %v299_v52  ;;  %v1466_v56 = vld [vmem:[%s2921_s4] ss:$0 sm:$0xff]  ;;  %v884_v3 = vld [vmem:[%s2925_s8 + $0x88] sm:$0xff]  ;;  %v886_v9 = vld [vmem:[%s2925_s8 + $0x98] sm:$0xff] }
  0x1d   :  { %v883_v2 = vld [vmem:[%s2925_s8 + $0x80] sm:$0xff]  ;;  %v868_v6 = vld [vmem:[%s2925_s8 + $0x8] sm:$0xff]  ;;  %v869_v12 = vld [vmem:[%s2925_s8 + $0x10] sm:$0xff] }
  0x1e   :  { %1813 = vmatpush3.bf16.msra.mxu1 %v1812_v0  ;;  %1829 = vmatpush3.bf16.msra.mxu0 %v1826_v17  ;;  %v1854_v5 = vpack.c.bf16 %v884_v3, %v883_v2  ;;  %v870_v13 = vld [vmem:[%s2925_s8 + $0x18] sm:$0xff]  ;;  %v915_v14 = vld [vmem:[%s2925_s8 + $0x180] sm:$0xff]  ;;  %v916_v15 = vld [vmem:[%s2925_s8 + $0x188] sm:$0xff] }
  0x1f   :  { %1815 = vmatprep.subr.bf16.mxu1 %v1814_v1  ;;  %1831 = vmatprep.subr.bf16.mxu0 %v1830_v20  ;;  %v899_v16 = vld [vmem:[%s2925_s8 + $0x100] sm:$0xff]  ;;  %v900_v17 = vld [vmem:[%s2925_s8 + $0x108] sm:$0xff]  ;;  %v1860_v18 = vpack.c.bf16 %v870_v13, %v869_v12  ;;  %v1886_v19 = vpack.c.bf16 %v916_v15, %v915_v14  ;;  %v918_v27 = vld [vmem:[%s2925_s8 + $0x198] sm:$0xff] }
  0x20   :  { %v887_v21 = vld [vmem:[%s2925_s8 + $0xa0] sm:$0xff]  ;;  %v888_v22 = vld [vmem:[%s2925_s8 + $0xa8] sm:$0xff]  ;;  %v901_v29 = vld [vmem:[%s2925_s8 + $0x110] sm:$0xff] }
  0x21   :  { %v1862_v24 = vpack.c.bf16 %v888_v22, %v887_v21  ;;  %v872_v25 = vld [vmem:[%s2925_s8 + $0x28] sm:$0xff]  ;;  %v902_v30 = vld [vmem:[%s2925_s8 + $0x118] sm:$0xff]  ;;  %v889_v31 = vld [vmem:[%s2925_s8 + $0xb0] sm:$0xff] }
  0x22   :  { %1817 = vmatpush3.bf16.msra.mxu1 %v1816_v4  ;;  %1833 = vmatpush3.bf16.msra.mxu0 %v1830_v20  ;;  %v867_v4 = vld [vmem:[%s2925_s8] sm:$0xff]  ;;  %v1888_v20 = vpack.c.bf16 %v900_v17, %v899_v16  ;;  %v922_v47 = vld [vmem:[%s2925_s8 + $0x1b8] sm:$0xff]  ;;  %v925_v3 = vld [vmem:[%s2925_s8 + $0x1d0] sm:$0xff] }
  0x23   :  { %1819 = vmatprep.subr.bf16.mxu1 %v1818_v8  ;;  %1835 = vmatprep.subr.bf16.mxu0 %v1834_v23  ;;  %v885_v8 = vld [vmem:[%s2925_s8 + $0x90] sm:$0xff]  ;;  %v1856_v10 = vpack.c.bf16 %v868_v6, %v867_v4  ;;  %v875_v49 = vld [vmem:[%s2925_s8 + $0x40] sm:$0xff]  ;;  %v906_v52 = vld [vmem:[%s2925_s8 + $0x138] sm:$0xff] }
  0x24   :  { %v878_v2 = vld [vmem:[%s2925_s8 + $0x58] sm:$0xff]  ;;  %v896_v6 = vld [vmem:[%s2925_s8 + $0xe8] sm:$0xff]  ;;  %v879_v14 = vld [vmem:[%s2925_s8 + $0x60] sm:$0xff] }
  0x25   :  { %v926_v4 = vld [vmem:[%s2925_s8 + $0x1d8] sm:$0xff]  ;;  %v880_v15 = vld [vmem:[%s2925_s8 + $0x68] sm:$0xff] }
  0x26   :  { %1821 = vmatpush3.bf16.msra.mxu1 %v1820_v11  ;;  %1837 = vmatpush3.bf16.msra.mxu0 %v1834_v23  ;;  %v1858_v11 = vpack.c.bf16 %v886_v9, %v885_v8  ;;  %v871_v23 = vld [vmem:[%s2925_s8 + $0x20] sm:$0xff]  ;;  %v910_v12 = vld [vmem:[%s2925_s8 + $0x158] sm:$0xff]  ;;  %v1880_v17 = vpack.c.bf16 %v880_v15, %v879_v14 }
  0x27   :  { %1839 = vmatprep.subr.bf16.mxu0 %v1838_v26  ;;  %1855 = vmatprep.subr.bf16.mxu1 %v1854_v5  ;;  %v895_v5 = vld [vmem:[%s2925_s8 + $0xe0] sm:$0xff] }
  0x28   :  { %v1878_v13 = vpack.c.bf16 %v896_v6, %v895_v5 }
  0x2a   :  { %1841 = vmatpush3.bf16.msra.mxu0 %v1838_v26  ;;  %v917_v26 = vld [vmem:[%s2925_s8 + $0x190] sm:$0xff] }
  0x2b   :  { %1843 = vmatprep.subr.bf16.mxu0 %v1842_v48  ;;  %v1890_v28 = vpack.c.bf16 %v918_v27, %v917_v26 }
  0x2e   :  { %1845 = vmatpush3.bf16.msra.mxu0 %v1842_v48 }
  0x2f   :  { %1847 = vmatprep.subr.bf16.mxu0 %v1846_v51 }
  0x32   :  { %1849 = vmatpush3.bf16.msra.mxu0 %v1846_v51  ;;  %v905_v51 = vld [vmem:[%s2925_s8 + $0x130] sm:$0xff] }
  0x33   :  { %1851 = vmatprep.subr.bf16.mxu0 %v1850_v54 }
  0x36   :  { %1853 = vmatpush3.bf16.msra.mxu0 %v1850_v54  ;;  %v876_v54 = vld [vmem:[%s2925_s8 + $0x48] sm:$0xff] }
  0x37   :  { %1887 = vmatprep.subr.bf16.mxu0 %v1886_v19 }
  0xe7   :  { %v154_v34 = vpop.f32.mrb[0].mxu0 }
  0xe8   :  { %v155_v35 = vadd.f32 %v154_v34, %v74_v32  ;;  %v156_v36 = vpop.f32.mrb[1].mxu0  ;;  %v1864_v34 = vpack.c.bf16 %v872_v25, %v871_v23 }
  0xe9   :  { %v157_v37 = vadd.f32 %v156_v36, %v78_v33  ;;  %v920_v36 = vld [vmem:[%s2925_s8 + $0x1a8] sm:$0xff] }
  0xea   :  { %v165_v40 = vmax.f32 %v155_v35, 0.0  ;;  %v919_v35 = vld [vmem:[%s2925_s8 + $0x1a0] sm:$0xff] }
  0xeb   :  { %v160_v38 = vpop.f32.mrb[2].mxu0  ;;  %v166_v39 = vmax.f32 %v157_v37, 0.0  ;;  %v903_v37 = vld [vmem:[%s2925_s8 + $0x120] sm:$0xff] }
  0xec   :  { %v161_v41 = vadd.f32 %v160_v38, %v74_v32  ;;  %v162_v42 = vpop.f32.mrb[3].mxu0  ;;  %v1892_v32 = vpack.c.bf16 %v902_v30, %v901_v29 }
  0xed   :  { %v163_v43 = vadd.f32 %v162_v42, %v78_v33  ;;  %272 = vmatprep.mubr.f32.mxu1 %v166_v39  ;;  %v890_v33 = vld [vmem:[%s2925_s8 + $0xb8] sm:$0xff]  ;;  %v873_v39 = vld [vmem:[%s2925_s8 + $0x30] sm:$0xff]  ;;  %v904_v42 = vld [vmem:[%s2925_s8 + $0x128] sm:$0xff] }
  0xee   :  { %273 = vmatmul.mubr.f32.vlgmr.msra.gmra.mrb[0].mxu1 %v165_v40  ;;  %v167_v45 = vmax.f32 %v161_v41, 0.0  ;;  %v1866_v38 = vpack.c.bf16 %v890_v33, %v889_v31  ;;  %v874_v40 = vld [vmem:[%s2925_s8 + $0x38] sm:$0xff]  ;;  %v1894_v41 = vpack.c.bf16 %v920_v36, %v919_v35  ;;  %v1896_v46 = vpack.c.bf16 %v904_v42, %v903_v37 }
  0xef   :  { %v168_v44 = vmax.f32 %v163_v43, 0.0  ;;  %1857 = vmatpush3.bf16.msra.mxu1 %v1856_v10  ;;  %v891_v43 = vld [vmem:[%s2925_s8 + $0xc0] sm:$0xff]  ;;  %v1868_v48 = vpack.c.bf16 %v874_v40, %v873_v39  ;;  %v1906_v10 = vpack.c.bf16 %v926_v4, %v925_v3 }
  0xf0   :  { %1859 = vmatprep.subr.bf16.mxu1 %v1858_v11  ;;  %v909_v11 = vld [vmem:[%s2925_s8 + $0x150] sm:$0xff] }
  0xf1   :  { %277 = vmatprep.mubr.f32.mxu1 %v168_v44  ;;  %v892_v44 = vld [vmem:[%s2925_s8 + $0xc8] sm:$0xff]  ;;  %v1908_v16 = vpack.c.bf16 %v910_v12, %v909_v11 }
  0xf2   :  { %278 = vmatmul.mubr.f32.gmra.mrb[2].mxu1 %v167_v45  ;;  %v921_v45 = vld [vmem:[%s2925_s8 + $0x1b0] sm:$0xff]  ;;  %v1870_v53 = vpack.c.bf16 %v892_v44, %v891_v43 }
  0xf3   :  { %1861 = vmatpush3.bf16.msra.mxu1 %v1860_v18  ;;  %v1898_v50 = vpack.c.bf16 %v922_v47, %v921_v45  ;;  %v1467_v18 = vld [vmem:[%s2923_s6] ss:$0 sm:$0xff]  ;;  %s2020_s6 = smov 64  }
  0xf4   :  { %1863 = vmatprep.subr.bf16.mxu1 %v1862_v24 }
  0xf7   :  { %1865 = vmatpush3.bf16.msra.mxu1 %v1864_v34 }
  0xf8   :  { %1867 = vmatprep.subr.bf16.mxu1 %v1866_v38 }
  0xfb   :  { %1869 = vmatpush3.bf16.msra.mxu1 %v1868_v48 }
  0xfc   :  { %1871 = vmatprep.subr.bf16.mxu1 %v1870_v53 }
 0x1c1   :  { %v1553_v55 = vpop.f32.mrb[0].mxu1 }
 0x1c2   :  { %v1554_v57 = vpop.f32.mrb[1].mxu1 }
 0x1c3   :  { %v1555_v58 = vadd.f32 %v1554_v57, %v1553_v55  ;;  %v923_v55 = vld [vmem:[%s2925_s8 + $0x1c0] sm:$0xff]  ;;  %v893_v57 = vld [vmem:[%s2925_s8 + $0xd0] sm:$0xff] }
 0x1c5   :  { %v275_v59 = vadd.f32 %v1555_v58, %v1466_v56  ;;  %v1556_v60 = vpop.f32.mrb[2].mxu1  ;;  %v894_v58 = vld [vmem:[%s2925_s8 + $0xd8] sm:$0xff] }
 0x1c6   :  { %v1557_v61 = vpop.f32.mrb[3].mxu1 }
 0x1c7   :  { %v283_v62 = vmax.f32 %v275_v59, 0.0  ;;  %v1558_v63 = vadd.f32 %v1557_v61, %v1556_v60  ;;  %v1900_v59 = vpack.c.bf16 %v906_v52, %v905_v51  ;;  %v1872_v60 = vpack.c.bf16 %v876_v54, %v875_v49  ;;  %v877_v61 = vld [vmem:[%s2925_s8 + $0x50] sm:$0xff] }
 0x1c8   :  { %v1876_v9 = vpack.c.bf16 %v878_v2, %v877_v61 }
 0x1c9   :  { %v280_v0 = vadd.f32 %v1558_v63, %v1466_v56  ;;  %1715 = vmatprep.mubr.f32.mxu0 %v283_v62  ;;  %v924_v56 = vld [vmem:[%s2925_s8 + $0x1c8] sm:$0xff]  ;;  %v907_v63 = vld [vmem:[%s2925_s8 + $0x140] sm:$0xff]  ;;  %1873 = vmatpush3.bf16.msra.mxu1 %v1872_v60 }
 0x1ca   :  { %v1902_v62 = vpack.c.bf16 %v924_v56, %v923_v55 }
 0x1cb   :  { %v284_v1 = vmax.f32 %v280_v0, 0.0  ;;  %v908_v0 = vld [vmem:[%s2925_s8 + $0x148] sm:$0xff] }
 0x1cc   :  { %v1904_v8 = vpack.c.bf16 %v908_v0, %v907_v63 }
 0x1cd   :  { %1716 = vmatmul.mubr.f32.vlgmr.msra.gmra.mrb[4].mxu0 %v284_v1  ;;  %v1874_v1 = vpack.c.bf16 %v894_v58, %v893_v57 }
 0x1ce   :  { %1889 = vmatpush3.bf16.msra.mxu0 %v1888_v20 }
 0x1cf   :  { %1891 = vmatprep.subr.bf16.mxu0 %v1890_v28  ;;  %1875 = vmatprep.subr.bf16.mxu1 %v1874_v1 }
 0x1d0   :  { %1877 = vmatpush3.bf16.msra.mxu1 %v1876_v9 }
 0x1d1   :  { %1879 = vmatprep.subr.bf16.mxu1 %v1878_v13 }
 0x1d2   :  { %1893 = vmatpush3.bf16.msra.mxu0 %v1892_v32 }
 0x1d3   :  { %1895 = vmatprep.subr.bf16.mxu0 %v1894_v41 }
 0x1d4   :  { %1881 = vmatpush3.bf16.msra.mxu1 %v1880_v17 }
 0x1d6   :  { %1897 = vmatpush3.bf16.msra.mxu0 %v1896_v46 }
 0x1d7   :  { %1899 = vmatprep.subr.bf16.mxu0 %v1898_v50 }
 0x1da   :  { %1901 = vmatpush3.bf16.msra.mxu0 %v1900_v59 }
 0x1db   :  { %1903 = vmatprep.subr.bf16.mxu0 %v1902_v62 }
 0x1de   :  { %1905 = vmatpush3.bf16.msra.mxu0 %v1904_v8 }
 0x1df   :  { %1907 = vmatprep.subr.bf16.mxu0 %v1906_v10 }
 0x1e2   :  { %1909 = vmatpush3.bf16.msra.mxu0 %v1908_v16 }
 0x2a0   :  { %v1717_v19 = vpop.f32.mrb[4].mxu0 }
 0x2a1   :  { %v380_v20 = vadd.f32 %v1717_v19, %v1467_v18  ;;  %v374_v21 = vpop.f32.mrb[5].mxu0 }
 0x2a2   :  { %v375_v27 = vadd.f32 %v1467_v18, %v374_v21 }
 0x2a3   :  { %v2471_v22 = vmax.f32 %v380_v20, 0.0 }
 0x2a4   :  { %v2539_v6 = vmax.f32 %v375_v27, 0.0 }
 0x2a5   :  { %vm418_vm1 = vcmp.ge.f32.partialorder %v2471_v22, -1.8  ;;  %vm420_vm2 = vcmp.lt.f32.partialorder %v2471_v22, -1.4  ;;  %vm428_vm3 = vcmp.ge.f32.partialorder %v2471_v22, -1.4 }
 0x2a6   :  { %vm2476_vm4 = vmand %vm418_vm1, %vm420_vm2  ;;  %vm430_vm5 = vcmp.lt.f32.partialorder %v2471_v22, -1.0  ;;  %vm438_vm6 = vcmp.ge.f32.partialorder %v2471_v22, -1.0  ;;  %vm440_vm7 = vcmp.lt.f32.partialorder %v2471_v22, -0.6  ;;  %vm448_vm8 = vcmp.ge.f32.partialorder %v2471_v22, -0.6 }
 0x2a7   :  { %vm432_vm9 = vmand %vm428_vm3, %vm430_vm5  ;;  %vm450_vm10 = vcmp.lt.f32.partialorder %v2471_v22, -0.2  ;;  %vm458_vm11 = vcmp.ge.f32.partialorder %v2471_v22, -0.2  ;;  %v2933_v24 = vsub.f32 -1.0, %v2471_v22  ;;  %v2491_v26 = vadd.f32 1.0, %v2471_v22 }
 0x2a8   :  { %v1473_v25 = vsel %vm432_vm9, 1.0, %v2019_v7  ;;  %vm442_vm12 = vmand %vm438_vm6, %vm440_vm7  ;;  %vm460_vm13 = vcmp.lt.f32.partialorder %v2471_v22, 0.2  ;;  %vm468_vm14 = vcmp.ge.f32.partialorder %v2471_v22, 0.2  ;;  %v2500_v30 = vsel %vm2476_vm4, 1.0, %v2019_v7 }
 0x2a9   :  { %v1475_v28 = vsel %vm442_vm12, 1.0, %v2019_v7  ;;  %vm452_vm15 = vmand %vm448_vm8, %vm450_vm10  ;;  %vm470_vm1 = vcmp.lt.f32.partialorder %v2471_v22, 0.6  ;;  %v540_v29 = vmul.f32 2.5, %v2933_v24  ;;  %v1493_v31 = vadd.f32 1.8, %v2471_v22 }
 0x2aa   :  { %vm462_vm2 = vmand %vm458_vm11, %vm460_vm13  ;;  %v2504_v32 = vadd.f32 1.4, %v2471_v22  ;;  %v562_v33 = vmul.f32 2.5, %v2491_v26  ;;  %v1477_v34 = vsel %vm452_vm15, 1.0, %v2019_v7  ;;  %v2510_v37 = vsub.f32 -0.6, %v2471_v22 }
 0x2ab   :  { %v1479_v35 = vsel %vm462_vm2, 1.0, %v2019_v7  ;;  %vm472_vm3 = vmand %vm468_vm14, %vm470_vm1  ;;  %v542_v36 = vmul.f32 %v1473_v25, %v540_v29  ;;  %v534_v39 = vmul.f32 2.5, %v1493_v31  ;;  %v566_v43 = vsub.f32 -0.2, %v2471_v22 }
 0x2ac   :  { %v1481_v38 = vsel %vm472_vm3, 1.0, %v2019_v7  ;;  %v548_v40 = vmul.f32 2.5, %v2504_v32  ;;  %v564_v41 = vmul.f32 %v1475_v28, %v562_v33  ;;  %v554_v42 = vmul.f32 2.5, %v2510_v37 }
 0x2ad   :  { %v2517_v44 = vadd.f32 0.6, %v2471_v22  ;;  %v668_v45 = vmul.f32 1.25, %v1493_v31  ;;  %v536_v46 = vmul.f32 %v2500_v30, %v534_v39  ;;  %v2521_v48 = vsub.f32 0.2, %v2471_v22 }
 0x2ae   :  { %v550_v47 = vmul.f32 %v1473_v25, %v548_v40  ;;  %v2524_v49 = vadd.f32 0.2, %v2471_v22  ;;  %v556_v50 = vmul.f32 %v1475_v28, %v554_v42  ;;  %v568_v51 = vmul.f32 2.5, %v566_v43 }
 0x2af   :  { %v576_v52 = vmul.f32 2.5, %v2517_v44  ;;  %v594_v53 = vsub.f32 0.6, %v2471_v22  ;;  %v2528_v54 = vadd.f32 %v542_v36, %v536_v46  ;;  %v582_v55 = vmul.f32 2.5, %v2521_v48 }
 0x2b0   :  { %v590_v56 = vmul.f32 2.5, %v2524_v49  ;;  %v2533_v57 = vadd.f32 -0.2, %v2471_v22  ;;  %v558_v58 = vadd.f32 %v556_v50, %v550_v47  ;;  %v570_v59 = vmul.f32 %v1477_v34, %v568_v51 }
 0x2b1   :  { %v578_v60 = vmul.f32 %v1477_v34, %v576_v52  ;;  %v596_v61 = vmul.f32 2.5, %v594_v53  ;;  %v584_v62 = vmul.f32 %v1479_v35, %v582_v55  ;;  %v670_v1 = vmul.f32 %v668_v45, %v2528_v54 }
 0x2b2   :  { %v592_v63 = vmul.f32 %v1479_v35, %v590_v56  ;;  %v604_v0 = vmul.f32 2.5, %v2533_v57  ;;  %v572_v2 = vadd.f32 %v570_v59, %v564_v41  ;;  %v672_v4 = vmul.f32 1.25, %v2510_v37 }
 0x2b3   :  { %v598_v3 = vmul.f32 %v1481_v38, %v596_v61  ;;  %v678_v5 = vmul.f32 1.25, %v2504_v32  ;;  %v586_v8 = vadd.f32 %v584_v62, %v578_v60  ;;  %v682_v9 = vmul.f32 1.25, %v566_v43 }
 0x2b4   :  { %v688_v10 = vmul.f32 1.25, %v2491_v26  ;;  %v674_v12 = vmul.f32 %v672_v4, %v558_v58  ;;  %v692_v14 = vmul.f32 1.25, %v2521_v48  ;;  %v698_v17 = vmul.f32 1.25, %v2517_v44 }
 0x2b5   :  { %v2542_v11 = vadd.f32 %v598_v3, %v592_v63  ;;  %v680_v13 = vmul.f32 %v678_v5, %v558_v58  ;;  %v684_v15 = vmul.f32 %v682_v9, %v572_v2  ;;  %v702_v18 = vmul.f32 1.25, %v594_v53 }
 0x2b6   :  { %v690_v16 = vmul.f32 %v688_v10, %v572_v2  ;;  %v2546_v19 = vmul.f32 %v1481_v38, %v604_v0  ;;  %v2548_v20 = vadd.f32 %v674_v12, %v670_v1  ;;  %v694_v21 = vmul.f32 %v692_v14, %v586_v8 }
 0x2b7   :  { %v758_v23 = vmul.f32 0.8333333, %v1493_v31  ;;  %v2550_v25 = vadd.f32 %v684_v15, %v680_v13  ;;  %v700_v27 = vmul.f32 %v698_v17, %v586_v8  ;;  %v704_v28 = vmul.f32 %v702_v18, %v2542_v11 }
 0x2b8   :  { %v762_v29 = vmul.f32 0.8333333, %v566_v43  ;;  %v2553_v33 = vadd.f32 %v694_v21, %v690_v16  ;;  %v778_v35 = vmul.f32 0.8333333, %v2491_v26  ;;  %v782_v36 = vmul.f32 0.8333333, %v594_v53 }
 0x2b9   :  { %v760_v34 = vmul.f32 %v758_v23, %v2548_v20  ;;  %v2557_v39 = vadd.f32 %v704_v28, %v700_v27  ;;  %vm417_vm4 = vcmp.ge.f32.partialorder %v2539_v6, -1.8  ;;  %vm419_vm5 = vcmp.lt.f32.partialorder %v2539_v6, -1.4 }
 0x2ba   :  { %v764_v38 = vmul.f32 %v762_v29, %v2550_v25  ;;  %v780_v31 = vmul.f32 %v778_v35, %v2553_v33  ;;  %vm421_vm6 = vmand %vm417_vm4, %vm419_vm5  ;;  %vm427_vm7 = vcmp.ge.f32.partialorder %v2539_v6, -1.4  ;;  %vm429_vm8 = vcmp.lt.f32.partialorder %v2539_v6, -1.0 }
 0x2bb   :  { %vm437_vm9 = vcmp.ge.f32.partialorder %v2539_v6, -1.0  ;;  %v784_v26 = vmul.f32 %v782_v36, %v2557_v39  ;;  %v2568_v41 = vsel %vm421_vm6, 1.0, %v2019_v7  ;;  %vm431_vm10 = vmand %vm427_vm7, %vm429_vm8  ;;  %vm439_vm11 = vcmp.lt.f32.partialorder %v2539_v6, -0.6 }
 0x2bc   :  { %v766_v40 = vadd.f32 %v764_v38, %v760_v34  ;;  %v1472_v42 = vsel %vm431_vm10, 1.0, %v2019_v7  ;;  %vm441_vm12 = vmand %vm437_vm9, %vm439_vm11  ;;  %vm447_vm13 = vcmp.ge.f32.partialorder %v2539_v6, -0.6  ;;  %vm449_vm14 = vcmp.lt.f32.partialorder %v2539_v6, -0.2 }
 0x2bd   :  { %v537_v43 = vsub.f32 -1.0, %v2539_v6  ;;  %v786_v45 = vadd.f32 %v784_v26, %v780_v31  ;;  %v1474_v46 = vsel %vm441_vm12, 1.0, %v2019_v7  ;;  %vm451_vm15 = vmand %vm447_vm13, %vm449_vm14  ;;  %vm457_vm1 = vcmp.ge.f32.partialorder %v2539_v6, -0.2 }
 0x2be   :  { %vm459_vm2 = vcmp.lt.f32.partialorder %v2539_v6, 0.2  ;;  %v1476_v47 = vsel %vm451_vm15, 1.0, %v2019_v7  ;;  %vm467_vm4 = vcmp.ge.f32.partialorder %v2539_v6, 0.2  ;;  %v1496_v0 = vadd.f32 1.0, %v2539_v6 }
 0x2bf   :  { %vm461_vm3 = vmand %vm457_vm1, %vm459_vm2  ;;  %vm469_vm5 = vcmp.lt.f32.partialorder %v2539_v6, 0.6  ;;  %v539_v50 = vmul.f32 2.5, %v537_v43  ;;  %v1977_v51 = vpack.i.bf16 %v766_v40, %v786_v45  ;;  %v2583_v53 = vadd.f32 2.2, %v2539_v6 }
 0x2c0   :  { %v1478_v52 = vsel %vm461_vm3, 1.0, %v2019_v7  ;;  %vm471_vm6 = vmand %vm467_vm4, %vm469_vm5  ;;  %v523_v55 = vsub.f32 -1.4, %v2539_v6  ;;  %v1492_v58 = vadd.f32 1.8, %v2539_v6  ;;  %v561_v8 = vmul.f32 2.5, %v1496_v0 }
 0x2c1   :  { %v1480_v56 = vsel %vm471_vm6, 1.0, %v2019_v7  ;;  %v541_v59 = vmul.f32 %v1472_v42, %v539_v50  ;;  %v2589_v60 = vadd.f32 1.4, %v2539_v6  ;;  %1978 = vrot.lane.b32.xlu1 %v1977_v51, %s2020_s6  ;;  %v2593_v61 = vmul.f32 2.5, %v2583_v53 }
 0x2c2   :  { %v2595_v62 = vmul.f32 2.5, %v523_v55  ;;  %v551_v63 = vsub.f32 -0.6, %v2539_v6  ;;  %v533_v1 = vmul.f32 2.5, %v1492_v58  ;;  %v565_v3 = vsub.f32 -0.2, %v2539_v6 }
 0x2c3   :  { %v547_v2 = vmul.f32 2.5, %v2589_v60  ;;  %v1498_v4 = vadd.f32 0.6, %v2539_v6  ;;  %v2603_v9 = vsub.f32 0.2, %v2539_v6  ;;  %v563_v17 = vmul.f32 %v1474_v46, %v561_v8 }
 0x2c4   :  { %v553_v5 = vmul.f32 2.5, %v551_v63  ;;  %v2606_v10 = vadd.f32 0.2, %v2539_v6  ;;  %v535_v12 = vmul.f32 %v2568_v41, %v533_v1  ;;  %v567_v14 = vmul.f32 2.5, %v565_v3 }
 0x2c5   :  { %v549_v13 = vmul.f32 %v1472_v42, %v547_v2  ;;  %v575_v15 = vmul.f32 2.5, %v1498_v4  ;;  %v581_v18 = vmul.f32 2.5, %v2603_v9  ;;  %v593_v29 = vsub.f32 0.6, %v2539_v6 }
 0x2c6   :  { %v555_v16 = vmul.f32 %v1474_v46, %v553_v5  ;;  %v589_v21 = vmul.f32 2.5, %v2606_v10  ;;  %v543_v23 = vadd.f32 %v541_v59, %v535_v12  ;;  %v569_v27 = vmul.f32 %v1476_v47, %v567_v14 }
 0x2c7   :  { %v577_v28 = vmul.f32 %v1476_v47, %v575_v15  ;;  %v583_v35 = vmul.f32 %v1478_v52, %v581_v18  ;;  %v2613_v38 = vadd.f32 -0.2, %v2539_v6  ;;  %v595_v40 = vmul.f32 2.5, %v593_v29 }
 0x2c8   :  { %v557_v34 = vadd.f32 %v555_v16, %v549_v13  ;;  %v591_v36 = vmul.f32 %v1478_v52, %v589_v21  ;;  %v571_v31 = vadd.f32 %v569_v27, %v563_v17  ;;  %v661_v26 = vmul.f32 1.25, %v537_v43 }
 0x2c9   :  { %v667_v42 = vmul.f32 1.25, %v1492_v58  ;;  %v585_v45 = vadd.f32 %v583_v35, %v577_v28  ;;  %v603_v46 = vmul.f32 2.5, %v2613_v38  ;;  %v671_v50 = vmul.f32 1.25, %v551_v63 }
 0x2ca   :  { %v677_v51 = vmul.f32 1.25, %v2589_v60  ;;  %v597_v55 = vmul.f32 %v1480_v56, %v595_v40  ;;  %v681_v59 = vmul.f32 1.25, %v565_v3  ;;  %v687_v1 = vmul.f32 1.25, %v1496_v0 }
 0x2cb   :  { %v669_v47 = vmul.f32 %v667_v42, %v543_v23  ;;  %v2617_v2 = vmul.f32 %v1480_v56, %v603_v46  ;;  %v673_v52 = vmul.f32 %v671_v50, %v557_v34  ;;  %v691_v8 = vmul.f32 1.25, %v2603_v9 }
 0x2cc   :  { %v679_v5 = vmul.f32 %v677_v51, %v557_v34  ;;  %v2620_v12 = vadd.f32 %v597_v55, %v591_v36  ;;  %v683_v43 = vmul.f32 %v681_v59, %v571_v31  ;;  %v689_v13 = vmul.f32 %v687_v1, %v571_v31 }
 0x2cd   :  { %v697_v14 = vmul.f32 1.25, %v1498_v4  ;;  %v675_v15 = vadd.f32 %v673_v52, %v669_v47  ;;  %v693_v16 = vmul.f32 %v691_v8, %v585_v45  ;;  %v701_v17 = vmul.f32 1.25, %v593_v29 }
 0x2ce   :  { %v751_v18 = vmul.f32 0.8333333, %v551_v63  ;;  %v2622_v21 = vadd.f32 %v683_v43, %v679_v5  ;;  %v757_v28 = vmul.f32 0.8333333, %v1492_v58  ;;  %v761_v35 = vmul.f32 0.8333333, %v565_v3 }
 0x2cf   :  { %v699_v27 = vmul.f32 %v697_v14, %v585_v45  ;;  %v2624_v56 = vadd.f32 %v693_v16, %v689_v13  ;;  %v703_v34 = vmul.f32 %v701_v17, %v2620_v12  ;;  %v777_v40 = vmul.f32 0.8333333, %v1496_v0 }
 0x2d0   :  { %v781_v42 = vmul.f32 0.8333333, %v593_v29  ;;  %v759_v36 = vmul.f32 %v757_v28, %v675_v15  ;;  %v763_v46 = vmul.f32 %v761_v35, %v2622_v21  ;;  %v787_v31 = vmul.f32 0.8333333, %v1498_v4 }
 0x2d1   :  { %vm407_vm7 = vcmp.ge.f32.partialorder %v2539_v6, -2.2  ;;  %v705_v50 = vadd.f32 %v703_v34, %v699_v27  ;;  %v779_v63 = vmul.f32 %v777_v40, %v2624_v56  ;;  %vm409_vm8 = vcmp.lt.f32.partialorder %v2539_v6, -1.8 }
 0x2d2   :  { %v527_v58 = vmul.f32 %v2568_v41, %v2595_v62  ;;  %v765_v3 = vadd.f32 %v763_v46, %v759_v36  ;;  %vm411_vm9 = vmand %vm407_vm7, %vm409_vm8  ;;  %v2633_v45 = vmul.f32 %v661_v26, %v543_v23  ;;  %v2635_v0 = vmul.f32 %v751_v18, %v675_v15 }
 0x2d3   :  { %vm478_vm10 = vcmp.ge.f32.partialorder %v2471_v22, 0.6  ;;  %v783_v29 = vmul.f32 %v781_v42, %v705_v50  ;;  %v2638_v4 = vmul.f32 %v787_v31, %v705_v50  ;;  %v1468_v51 = vsel %vm411_vm9, 1.0, %v2019_v7 }
 0x2d4   :  { %vm480_vm11 = vcmp.lt.f32.partialorder %v2471_v22, 1.0  ;;  %v521_v55 = vmul.f32 %v1468_v51, %v2593_v61  ;;  %vm488_vm13 = vcmp.ge.f32.partialorder %v2471_v22, 1.0  ;;  %vm490_vm14 = vcmp.lt.f32.partialorder %v2471_v22, 1.4 }
 0x2d5   :  { %vm482_vm12 = vmand %vm478_vm10, %vm480_vm11  ;;  %vm498_vm15 = vcmp.ge.f32.partialorder %v2471_v22, 1.4  ;;  %v785_v41 = vadd.f32 %v783_v29, %v779_v63  ;;  %vm500_vm2 = vcmp.lt.f32.partialorder %v2471_v22, 1.8  ;;  %vm508_vm3 = vcmp.ge.f32.partialorder %v2471_v22, 1.8 }
 0x2d6   :  { %v1483_v62 = vsel %vm482_vm12, 1.0, %v2019_v7  ;;  %vm492_vm1 = vmand %vm488_vm13, %vm490_vm14  ;;  %v2649_v23 = vadd.f32 %v527_v58, %v521_v55  ;;  %vm510_vm5 = vcmp.lt.f32.partialorder %v2471_v22, 2.2  ;;  %v2654_v61 = vsub.f32 1.0, %v2471_v22 }
 0x2d7   :  { %v1485_v26 = vsel %vm492_vm1, 1.0, %v2019_v7  ;;  %vm502_vm4 = vmand %vm498_vm15, %vm500_vm2  ;;  %v1967_v47 = vpack.i.bf16 %v765_v3, %v785_v41  ;;  %v1505_v1 = vadd.f32 -0.6, %v2471_v22  ;;  %v622_v52 = vsub.f32 1.4, %v2471_v22 }
 0x2d8   :  { %v1487_v59 = vsel %vm502_vm4, 1.0, %v2019_v7  ;;  %vm512_vm6 = vmand %vm508_vm3, %vm510_vm5  ;;  %v610_v8 = vmul.f32 2.5, %v2654_v61  ;;  %v1507_v43 = vadd.f32 -1.0, %v2471_v22  ;;  %v2663_v13 = vsub.f32 1.8, %v2471_v22 }
 0x2d9   :  { %v1489_v5 = vsel %vm512_vm6, 1.0, %v2019_v7  ;;  %1968 = vrot.lane.b32.xlu0 %v1967_v47, %s2020_s6  ;;  %v618_v14 = vmul.f32 2.5, %v1505_v1  ;;  %v624_v15 = vmul.f32 2.5, %v622_v52  ;;  %v1509_v16 = vadd.f32 -1.4, %v2471_v22 }
 0x2da   :  { %v650_v17 = vsub.f32 2.2, %v2471_v22  ;;  %v612_v18 = vmul.f32 %v1483_v62, %v610_v8  ;;  %v632_v27 = vmul.f32 2.5, %v1507_v43  ;;  %v638_v28 = vmul.f32 2.5, %v2663_v13 }
 0x2db   :  { %v708_v35 = vmul.f32 1.25, %v2524_v49  ;;  %v620_v34 = vmul.f32 %v1483_v62, %v618_v14  ;;  %v626_v40 = vmul.f32 %v1485_v26, %v624_v15  ;;  %v646_v42 = vmul.f32 2.5, %v1509_v16 }
 0x2dc   :  { %v652_v36 = vmul.f32 2.5, %v650_v17  ;;  %v614_v46 = vadd.f32 %v612_v18, %v2546_v19  ;;  %v634_v31 = vmul.f32 %v1485_v26, %v632_v27  ;;  %v640_v50 = vmul.f32 %v1487_v59, %v638_v28 }
 0x2dd   :  { %v710_v63 = vmul.f32 %v708_v35, %v2542_v11  ;;  %v628_v58 = vadd.f32 %v626_v40, %v620_v34  ;;  %v648_v3 = vmul.f32 %v1487_v59, %v646_v42  ;;  %v712_v51 = vmul.f32 1.25, %v2654_v61 }
 0x2de   :  { %v654_v29 = vmul.f32 %v1489_v5, %v652_v36  ;;  %v642_v55 = vadd.f32 %v640_v50, %v634_v31  ;;  %v718_v41 = vmul.f32 1.25, %v2533_v57  ;;  %v722_v47 = vmul.f32 1.25, %v622_v52 }
 0x2df   :  { %v728_v8 = vmul.f32 1.25, %v1505_v1  ;;  %v714_v14 = vmul.f32 %v712_v51, %v614_v46  ;;  %v732_v15 = vmul.f32 1.25, %v2663_v13  ;;  %v738_v16 = vmul.f32 1.25, %v1507_v43 }
 0x2e0   :  { %v656_v62 = vadd.f32 %v654_v29, %v648_v3  ;;  %v720_v19 = vmul.f32 %v718_v41, %v614_v46  ;;  %v724_v26 = vmul.f32 %v722_v47, %v628_v58  ;;  %v742_v27 = vmul.f32 1.25, %v650_v17 }
 0x2e1   :  { %v730_v18 = vmul.f32 %v728_v8, %v628_v58  ;;  %v2675_v11 = vadd.f32 %v714_v14, %v710_v63  ;;  %v734_v59 = vmul.f32 %v732_v15, %v642_v55  ;;  %v740_v5 = vmul.f32 %v738_v16, %v642_v55 }
 0x2e2   :  { %v798_v28 = vmul.f32 0.8333333, %v2524_v49  ;;  %v2678_v35 = vadd.f32 %v724_v26, %v720_v19  ;;  %v744_v34 = vmul.f32 %v742_v27, %v656_v62  ;;  %v802_v40 = vmul.f32 0.8333333, %v622_v52 }
 0x2e3   :  { %v818_v42 = vmul.f32 0.8333333, %v1505_v1  ;;  %v2680_v36 = vadd.f32 %v734_v59, %v730_v18  ;;  %v822_v43 = vmul.f32 0.8333333, %v650_v17  ;;  %vm477_vm7 = vcmp.ge.f32.partialorder %v2539_v6, 0.6 }
 0x2e4   :  { %v800_v31 = vmul.f32 %v798_v28, %v2675_v11  ;;  %v746_v46 = vadd.f32 %v744_v34, %v740_v5  ;;  %v804_v50 = vmul.f32 %v802_v40, %v2678_v35  ;;  %vm479_vm8 = vcmp.lt.f32.partialorder %v2539_v6, 1.0 }
 0x2e5   :  { %vm487_vm9 = vcmp.ge.f32.partialorder %v2539_v6, 1.0  ;;  %v820_v49 = vmul.f32 %v818_v42, %v2680_v36  ;;  %vm481_vm10 = vmand %vm477_vm7, %vm479_vm8  ;;  %vm489_vm11 = vcmp.lt.f32.partialorder %v2539_v6, 1.4  ;;  %vm497_vm12 = vcmp.ge.f32.partialorder %v2539_v6, 1.4 }
 0x2e6   :  { %vm499_vm13 = vcmp.lt.f32.partialorder %v2539_v6, 1.8  ;;  %v806_v1 = vadd.f32 %v804_v50, %v800_v31  ;;  %v824_v52 = vmul.f32 %v822_v43, %v746_v46  ;;  %v1482_v17 = vsel %vm481_vm10, 1.0, %v2019_v7  ;;  %vm491_vm14 = vmand %vm487_vm9, %vm489_vm11 }
 0x2e7   :  { %vm507_vm15 = vcmp.ge.f32.partialorder %v2539_v6, 1.8  ;;  %v1484_v63 = vsel %vm491_vm14, 1.0, %v2019_v7  ;;  %vm501_vm1 = vmand %vm497_vm12, %vm499_vm13  ;;  %vm509_vm2 = vcmp.lt.f32.partialorder %v2539_v6, 2.2  ;;  %v2696_v58 = vsub.f32 1.0, %v2539_v6 }
 0x2e8   :  { %v1504_v3 = vadd.f32 -0.6, %v2539_v6  ;;  %v826_v29 = vadd.f32 %v824_v52, %v820_v49  ;;  %v1486_v51 = vsel %vm501_vm1, 1.0, %v2019_v7  ;;  %vm511_vm3 = vmand %vm507_vm15, %vm509_vm2  ;;  %v621_v55 = vsub.f32 1.4, %v2539_v6 }
 0x2e9   :  { %v1506_v41 = vadd.f32 -1.0, %v2539_v6  ;;  %v1488_v47 = vsel %vm511_vm3, 1.0, %v2019_v7  ;;  %v609_v8 = vmul.f32 2.5, %v2696_v58  ;;  %v2705_v14 = vsub.f32 1.8, %v2539_v6 }
 0x2ea   :  { %v617_v62 = vmul.f32 2.5, %v1504_v3  ;;  %v1982_v15 = vpack.i.bf16 %v806_v1, %v826_v29  ;;  %v623_v16 = vmul.f32 2.5, %v621_v55  ;;  %v1508_v26 = vadd.f32 -1.4, %v2539_v6 }
 0x2eb   :  { %v631_v19 = vmul.f32 2.5, %v1506_v41  ;;  %v611_v18 = vmul.f32 %v1482_v17, %v609_v8  ;;  %v637_v59 = vmul.f32 2.5, %v2705_v14  ;;  %v649_v5 = vsub.f32 2.2, %v2539_v6 }
 0x2ec   :  { %v619_v27 = vmul.f32 %v1482_v17, %v617_v62  ;;  %1983 = vrot.lane.b32.xlu1 %v1982_v15, %s2020_s6  ;;  %v625_v28 = vmul.f32 %v1484_v63, %v623_v16  ;;  %v645_v40 = vmul.f32 2.5, %v1508_v26  ;;  %v707_v42 = vmul.f32 1.25, %v2606_v10 }
 0x2ed   :  { %v633_v34 = vmul.f32 %v1484_v63, %v631_v19  ;;  %v613_v31 = vadd.f32 %v611_v18, %v2617_v2  ;;  %v639_v43 = vmul.f32 %v1486_v51, %v637_v59  ;;  %v651_v46 = vmul.f32 2.5, %v649_v5  ;;  %v897_v2 = vld [vmem:[%s2925_s8 + $0xf0] sm:$0xff] }
 0x2ee   :  { %v711_v50 = vmul.f32 1.25, %v2696_v58  ;;  %v627_v49 = vadd.f32 %v625_v28, %v619_v27  ;;  %v647_v1 = vmul.f32 %v1486_v51, %v645_v40  ;;  %v709_v52 = vmul.f32 %v707_v42, %v2620_v12  ;;  %v898_v51 = vld [vmem:[%s2925_s8 + $0xf8] sm:$0xff]  ;;  %v881_v59 = vld [vmem:[%s2925_s8 + $0x70] sm:$0xff]  ;;  %v927_v28 = vld [vmem:[%s2925_s8 + $0x1e0] sm:$0xff] }
 0x2ef   :  { %v717_v17 = vmul.f32 1.25, %v2613_v38  ;;  %v641_v29 = vadd.f32 %v639_v43, %v633_v34  ;;  %v653_v8 = vmul.f32 %v1488_v47, %v651_v46  ;;  %v721_v15 = vmul.f32 1.25, %v621_v55  ;;  %v928_v43 = vld [vmem:[%s2925_s8 + $0x1e8] sm:$0xff]  ;;  %v911_v46 = vld [vmem:[%s2925_s8 + $0x160] sm:$0xff] }
 0x2f0   :  { %v713_v62 = vmul.f32 %v711_v50, %v613_v31  ;;  %v727_v16 = vmul.f32 1.25, %v1504_v3  ;;  %v731_v19 = vmul.f32 1.25, %v2705_v14  ;;  %v737_v26 = vmul.f32 1.25, %v1506_v41  ;;  %v882_v41 = vld [vmem:[%s2925_s8 + $0x78] sm:$0xff]  ;;  %v912_v50 = vld [vmem:[%s2925_s8 + $0x168] sm:$0xff] }
 0x2f1   :  { %v719_v63 = vmul.f32 %v717_v17, %v613_v31  ;;  %v655_v12 = vadd.f32 %v653_v8, %v647_v1  ;;  %v723_v27 = vmul.f32 %v721_v15, %v627_v49  ;;  %v741_v47 = vmul.f32 1.25, %v649_v5 }
 0x2f2   :  { %v2723_v18 = vadd.f32 %v713_v62, %v709_v52  ;;  %v729_v34 = vmul.f32 %v727_v16, %v627_v49  ;;  %v733_v40 = vmul.f32 %v731_v19, %v641_v29  ;;  %v739_v42 = vmul.f32 %v737_v26, %v641_v29  ;;  %v400_v29 = vld [vmem:[%s2924_s7 + $0x8] sm:$0xff] }
 0x2f3   :  { %v797_v31 = vmul.f32 0.8333333, %v2606_v10  ;;  %v725_v1 = vadd.f32 %v723_v27, %v719_v63  ;;  %v743_v52 = vmul.f32 %v741_v47, %v655_v12  ;;  %v801_v17 = vmul.f32 0.8333333, %v621_v55  ;;  %v399_v10 = vld [vmem:[%s2924_s7] sm:$0xff]  ;;  %v930_v55 = vld [vmem:[%s2925_s8 + $0x1f8] sm:$0xff] }
 0x2f4   :  { %v817_v49 = vmul.f32 0.8333333, %v1504_v3  ;;  %v735_v8 = vadd.f32 %v733_v40, %v729_v34  ;;  %v821_v15 = vmul.f32 0.8333333, %v649_v5  ;;  %v1882_v16 = vpack.c.bf16 %v898_v51, %v897_v2  ;;  %v929_v3 = vld [vmem:[%s2925_s8 + $0x1f0] sm:$0xff]  ;;  %v914_v34 = vld [vmem:[%s2925_s8 + $0x178] sm:$0xff] }
 0x2f5   :  { %v799_v62 = vmul.f32 %v797_v31, %v2723_v18  ;;  %v745_v19 = vadd.f32 %v743_v52, %v739_v42  ;;  %v803_v26 = vmul.f32 %v801_v17, %v725_v1  ;;  %v1884_v24 = vpack.c.bf16 %v882_v41, %v881_v59 }
 0x2f6   :  { %v1910_v63 = vpack.c.bf16 %v928_v43, %v927_v28  ;;  %v819_v12 = vmul.f32 %v817_v49, %v735_v8  ;;  %1883 = vmatprep.subr.bf16.mxu1 %v1882_v16  ;;  %v1912_v27 = vpack.c.bf16 %v912_v50, %v911_v46  ;;  %v2757_v47 = vpack.c.bf16 %v400_v29, %v399_v10  ;;  %v913_v28 = vld [vmem:[%s2925_s8 + $0x170] sm:$0xff] }
 0x2f7   :  { %v767_v5 = vmul.f32 0.8333333, %v2589_v60  ;;  %v805_v2 = vadd.f32 %v803_v26, %v799_v62  ;;  %v823_v51 = vmul.f32 %v821_v15, %v745_v19  ;;  %1885 = vmatpush3.bf16.msra.mxu1 %v1884_v24  ;;  %v771_v59 = vmul.f32 0.8333333, %v2603_v9 }
 0x2f8   :  { %1911 = vmatprep.subr.bf16.mxu0 %v1910_v63  ;;  %v657_v41 = vmul.f32 1.25, %v2583_v53  ;;  %1919 = vmatprep.subr.bf16.mxu1 %v2757_v47  ;;  %v1914_v40 = vpack.c.bf16 %v930_v55, %v929_v3  ;;  %v1916_v31 = vpack.c.bf16 %v914_v34, %v913_v28  ;;  %v807_v43 = vmul.f32 0.8333333, %v2613_v38 }
 0x2f9   :  { %1913 = vmatpush3.bf16.msra.mxu0 %v1912_v27  ;;  %v769_v60 = vmul.f32 %v767_v5, %v2622_v21  ;;  %v825_v24 = vadd.f32 %v823_v51, %v819_v12  ;;  %v773_v42 = vmul.f32 %v771_v59, %v2624_v56  ;;  %v811_v46 = vmul.f32 0.8333333, %v2705_v14 }
 0x2fa   :  { %v659_v9 = vmul.f32 %v657_v41, %v2649_v23  ;;  %1915 = vmatprep.subr.bf16.mxu0 %v1914_v40  ;;  %v747_v49 = vmul.f32 0.8333333, %v2583_v53  ;;  %v809_v21 = vmul.f32 %v807_v43, %v725_v1  ;;  %v791_v29 = vmul.f32 0.8333333, %v2696_v58 }
 0x2fb   :  { %v1972_v50 = vpack.i.bf16 %v805_v2, %v825_v24  ;;  %v2774_v52 = vadd.f32 %v773_v42, %v769_v60  ;;  %v813_v10 = vmul.f32 %v811_v46, %v735_v8  ;;  %v808_v62 = vmul.f32 0.8333333, %v2533_v57  ;;  %v401_v24 = vld [vmem:[%s2924_s7 + $0x10] sm:$0xff] }
 0x2fc   :  { %v665_v17 = vadd.f32 %v2633_v45, %v659_v9  ;;  %v793_v14 = vmul.f32 %v791_v29, %v2723_v18  ;;  %v812_v45 = vmul.f32 0.8333333, %v2663_v13  ;;  %v792_v1 = vmul.f32 0.8333333, %v2654_v61 }
 0x2fd   :  { %1917 = vmatpush3.bf16.msra.mxu0 %v1916_v31  ;;  %1973 = vrot.lane.b32.xlu0 %v1972_v50, %s2020_s6  ;;  %v2779_v23 = vadd.f32 %v813_v10, %v809_v21  ;;  %v810_v8 = vmul.f32 %v808_v62, %v2678_v35  ;;  %vm408_vm4 = vcmp.ge.f32.partialorder %v2471_v22, -2.2  ;;  %vm410_vm5 = vcmp.lt.f32.partialorder %v2471_v22, -1.8  ;;  %v404_v10 = vld [vmem:[%s2924_s7 + $0x28] sm:$0xff]  ;;  %v405_v62 = vld [vmem:[%s2924_s7 + $0x30] sm:$0xff] }
 0x2fe   :  { %v749_v56 = vmul.f32 %v747_v49, %v665_v17  ;;  %v2787_v53 = vadd.f32 %v793_v14, %v2638_v4  ;;  %v814_v15 = vmul.f32 %v812_v45, %v2680_v36  ;;  %v2793_v16 = vmul.f32 %v792_v1, %v2675_v11  ;;  %vm412_vm6 = vmand %vm408_vm4, %vm410_vm5  ;;  %v406_v45 = vld [vmem:[%s2924_s7 + $0x38] sm:$0xff] }
 0x2ff   :  { %v524_v57 = vsub.f32 -1.4, %v2471_v22  ;;  %v1491_v4 = vadd.f32 2.2, %v2471_v22  ;;  %v386_v61 = vsub.f32 0.0, %v2471_v22  ;;  %v1469_v35 = vsel %vm412_vm6, 1.0, %v2019_v7 }
 0x300   :  { %v755_v38 = vadd.f32 %v2635_v0, %v749_v56  ;;  %v2795_v58 = vadd.f32 %v814_v15, %v810_v8  ;;  %v385_v0 = vsub.f32 0.0, %v2539_v6  ;;  %v2936_v27 = vsub.f32 -1.0, %v2471_v22 }
 0x301   :  { %v526_v13 = vmul.f32 2.5, %v524_v57  ;;  %v520_v11 = vmul.f32 2.5, %v1491_v4  ;;  %v389_v36 = vmul.f32 1.442695, %v386_v61  ;;  %v658_v12 = vmul.f32 1.25, %v1491_v4 }
 0x302   :  { %v387_v18 = vmul.f32 1.442695, %v385_v0  ;;  %v662_v5 = vmul.f32 1.25, %v2936_v27  ;;  %v768_v59 = vmul.f32 0.8333333, %v2504_v32  ;;  %vm1364_vm7 = vcmask 130048  }
 0x303   :  { %v528_v19 = vmul.f32 %v2500_v30, %v526_v13  ;;  %v522_v26 = vmul.f32 %v1469_v35, %v520_v11  ;;  %v772_v7 = vmul.f32 0.8333333, %v2521_v48  ;;  %v748_v42 = vmul.f32 0.8333333, %v1491_v4 }
 0x304   :  { %1987 = vpow2.f32 %v387_v18  ;;  %v664_v51 = vmul.f32 %v662_v5, %v2528_v54  ;;  %v770_v34 = vmul.f32 %v768_v59, %v2550_v25  ;;  %v402_v54 = vld [vmem:[%s2924_s7 + $0x18] sm:$0xff]  ;;  %v752_v32 = vmul.f32 0.8333333, %v2510_v37  ;;  %v403_v37 = vld [vmem:[%s2924_s7 + $0x20] sm:$0xff] }
 0x305   :  { %1989 = vpow2.f32 %v389_v36  ;;  %v530_v3 = vadd.f32 %v528_v19, %v522_v26  ;;  %v774_v60 = vmul.f32 %v772_v7, %v2553_v33  ;;  %v1922_v49 = vpack.c.bf16 %v402_v54, %v401_v24  ;;  %v1166_v26 = vld [vmem:[%s2926_s9 + $0x20] sm:$0xff] }
 0x306   :  { %v754_v25 = vmul.f32 %v752_v32, %v2548_v20  ;;  %v1926_v29 = vpack.c.bf16 %v404_v10, %v403_v37  ;;  %v788_v0 = vmul.f32 0.8333333, %v2517_v44  ;;  %v1260_v5 = vld [vmem:[%s2928_s11] sm:$0xff] }
 0x307   :  { %v660_v2 = vmul.f32 %v658_v12, %v530_v3  ;;  %v776_v17 = vadd.f32 %v774_v60, %v770_v34  ;;  %v1169_v12 = vld [vmem:[%s2926_s9 + $0x38] sm:$0xff] }
 0x308   :  { %v790_v61 = vmul.f32 %v788_v0, %v2557_v39  ;;  %v1162_v39 = vld [vmem:[%s2926_s9] sm:$0xff] }
 0x309   :  { %v666_v28 = vadd.f32 %v664_v51, %v660_v2  ;;  %v1261_v2 = vld [vmem:[%s2928_s11 + $0x8] sm:$0xff]  ;;  %v1518_v0 = vld [vmem:[%s2931_s14] ss:$0 sm:$0xff] }
 0x30a   :  { %v796_v44 = vadd.f32 %v2793_v16, %v790_v61  ;;  %v1165_v16 = vld [vmem:[%s2926_s9 + $0x18] sm:$0xff]  ;;  %v1950_v51 = vpack.c.bf16 %v1261_v2, %v1260_v5 }
 0x30b   :  { %v750_v43 = vmul.f32 %v748_v42, %v666_v28 }
 0x30e   :  { %v1988_v63 = vpop.eup %1987 }
 0x30f   :  { %v391_v55 = vadd.f32 1.0, %v1988_v63  ;;  %v1990_v30 = vpop.eup %1989  ;;  %v1167_v63 = vld [vmem:[%s2926_s9 + $0x28] sm:$0xff] }
 0x310   :  { %v392_v46 = vadd.f32 1.0, %v1990_v30  ;;  %v1942_v3 = vpack.c.bf16 %v1167_v63, %v1166_v26 }
 0x311   :  { %1991 = vrcp.f32 %v391_v55  ;;  %v1168_v55 = vld [vmem:[%s2926_s9 + $0x30] sm:$0xff] }
 0x312   :  { %1993 = vrcp.f32 %v392_v46  ;;  %v1946_v27 = vpack.c.bf16 %v1169_v12, %v1168_v55 }
 0x31b   :  { %v1992_v56 = vpop.eup %1991 }
 0x31c   :  { %v397_v14 = vmul.f32 %v1992_v56, %v2539_v6  ;;  %v1994_v1 = vpop.eup %1993 }
 0x31d   :  { %v398_v6 = vmul.f32 %v1994_v1, %v2471_v22 }
 0x333   :  { %v1979_v41 = vpop.permute.xlu1 %1978 }
 0x334   :  { %v1980_v48 = vunpack.i.l.bf16 %v1979_v41  ;;  %v1981_v21 = vunpack.i.h.bf16 %v1979_v41 }
 0x336   :  { %v862_v20 = vsel %vm81_vm0, %v776_v17, %v1980_v48 }
 0x34b   :  { %v1969_v40 = vpop.permute.xlu0 %1968 }
 0x34c   :  { %v1971_v9 = vunpack.i.h.bf16 %v1969_v40  ;;  %v1970_v31 = vunpack.i.l.bf16 %v1969_v40 }
 0x34e   :  { %v861_v33 = vsel %vm81_vm0, %v2774_v52, %v1970_v31  ;;  %v859_v50 = vsel %vm81_vm0, %v755_v38, %v1971_v9  ;;  %v756_v52 = vadd.f32 %v754_v25, %v750_v43 }
 0x34f   :  { %995 = vmatprep.mubr.f32.mxu1 %v861_v33  ;;  %v1262_v33 = vld [vmem:[%s2928_s11 + $0x10] sm:$0xff] }
 0x350   :  { %996 = vmatmul.mubr.f32.vlgmr.msra.gmra.mrb[4].mxu1 %v859_v50  ;;  %v860_v38 = vsel %vm81_vm0, %v756_v52, %v1981_v21  ;;  %v1263_v50 = vld [vmem:[%s2928_s11 + $0x18] sm:$0xff] }
 0x351   :  { %1921 = vmatpush3.bf16.msra.mxu1 %v2757_v47  ;;  %1000 = vmatprep.mubr.f32.mxu1 %v862_v20  ;;  %v1930_v47 = vpack.c.bf16 %v406_v45, %v405_v62  ;;  %v1954_v17 = vpack.c.bf16 %v1263_v50, %v1262_v33  ;;  %v1515_v62 = vld [vmem:[%s2929_s12] ss:$0 sm:$0xff] }
 0x352   :  { %1923 = vmatprep.subr.bf16.mxu1 %v1922_v49 }
 0x354   :  { %1001 = vmatmul.mubr.f32.gmra.mrb[6].mxu1 %v860_v38  ;;  %v1356_v38 = vld [vmem:[%s2930_s13 + $0x8] sm:$0xff] }
 0x355   :  { %1925 = vmatpush3.bf16.msra.mxu1 %v1922_v49  ;;  %1734 = vmatprep.mubr.msk.f32.mxu1 %vm81_vm0, %v397_v14  ;;  %v1512_v49 = vld [vmem:[%s2927_s10] ss:$0 sm:$0xff] }
 0x356   :  { %1927 = vmatprep.subr.bf16.mxu1 %v1926_v29 }
 0x359   :  { %1929 = vmatpush3.bf16.msra.mxu1 %v1926_v29  ;;  %v1355_v29 = vld [vmem:[%s2930_s13] sm:$0xff]  ;;  %s2021_s13 = smov [#allocation2]  }
 0x35a   :  { %1931 = vmatprep.subr.bf16.mxu1 %v1930_v47  ;;  %v1958_v14 = vpack.c.bf16 %v1356_v38, %v1355_v29  ;;  %s1453_s24 = sshll.u32 %s2021_s13, 4  ;;  %s1454_s24 = int_to_ptr.vmem [resolvable:$true] %s1453_s24 }
 0x35b   :  { %s1995_s12 = scalar_lea.vmem %s1454_s24, 256  ;;  %p2000_p1 = scmp.lt.s32.totalorder %s1454_s24, %s1454_s24 }
 0x35c   :  { %p1996_p0 = scmp.ne.s32.totalorder %s1454_s24, %s1995_s12  ;;  %p2001_p2 = scmp.lt.s32.totalorder %s1995_s12, %s1995_s12 }
 0x35d   :  { %1933 = vmatpush3.bf16.msra.mxu1 %v1930_v47 }
 0x35e   :  { %v1984_v8 = vpop.permute.xlu1 %1983  ;;  %1951 = vmatprep.subr.bf16.mxu1 %v1950_v51  ;;  %p2002_p3 = por %p2001_p2, %p2000_p1 }
 0x35f   :  { %v1985_v18 = vunpack.i.l.bf16 %v1984_v8  ;;  %v1986_v35 = vunpack.i.h.bf16 %v1984_v8 }
 0x360   :  { %1735 = vmatmul.mubr.msk.f32.vlgmr.msra.gmra.mrb[8].mxu1 %vm81_vm0, %v398_v6  ;;  %p2003_p4 = pnand %p2002_p3, %p1996_p0 }
 0x361   :  { %v866_v22 = vsel %vm81_vm0, %v2795_v58, %v1985_v18  ;;  %v864_v36 = vsel %vm81_vm0, %v796_v44, %v1986_v35  ;;  %v1164_v58 = vld [vmem:[%s2926_s9 + $0x10] sm:$0xff]  ;;  %1953 = vmatpush3.bf16.msra.mxu1 %v1950_v51 }
 0x362   :  { %v1938_v19 = vpack.c.bf16 %v1165_v16, %v1164_v58  ;;  %1955 = vmatprep.subr.bf16.mxu1 %v1954_v17 }
 0x365   :  { %1957 = vmatpush3.bf16.msra.mxu1 %v1954_v17 }
 0x366   :  { %1959 = vmatprep.subr.bf16.mxu1 %v1958_v14 }
 0x36f   :  { %v1974_v15 = vpop.permute.xlu0 %1973 }
 0x370   :  { %v1976_v57 = vunpack.i.h.bf16 %v1974_v15  ;;  %v1975_v4 = vunpack.i.l.bf16 %v1974_v15 }
 0x372   :  { %v865_v13 = vsel %vm81_vm0, %v2779_v23, %v1975_v4  ;;  %v863_v11 = vsel %vm81_vm0, %v2787_v53, %v1976_v57  ;;  %v1163_v23 = vld [vmem:[%s2926_s9 + $0x8] sm:$0xff] }
 0x373   :  { %1070 = vmatprep.mubr.f32.mxu0 %v865_v13  ;;  %v1934_v53 = vpack.c.bf16 %v1163_v23, %v1162_v39 }
 0x374   :  { %1071 = vmatmul.mubr.f32.vlgmr.msra.gmra.mrb[6].mxu0 %v863_v11 }
 0x375   :  { %1075 = vmatprep.mubr.f32.mxu0 %v866_v22  ;;  %1935 = vmatprep.subr.bf16.mxu0 %v1934_v53 }
 0x376   :  { %1937 = vmatpush3.bf16.msra.mxu0 %v1934_v53 }
 0x377   :  { %1939 = vmatprep.subr.bf16.mxu0 %v1938_v19 }
 0x378   :  { %1076 = vmatmul.mubr.f32.gmra.mrb[8].mxu0 %v864_v36 }
 0x37a   :  { %1941 = vmatpush3.bf16.msra.mxu0 %v1938_v19 }
 0x37b   :  { %1943 = vmatprep.subr.bf16.mxu0 %v1942_v3 }
 0x37e   :  { %1945 = vmatpush3.bf16.msra.mxu0 %v1942_v3 }
 0x37f   :  { %1947 = vmatprep.subr.bf16.mxu0 %v1946_v27 }
 0x382   :  { %1949 = vmatpush3.bf16.msra.mxu0 %v1946_v27 }
 0x423   :  { %v1609_v59 = vpop.f32.mrb[4].mxu1 }
 0x424   :  { %v1610_v7 = vpop.f32.mrb[5].mxu1 }
 0x425   :  { %v1611_v41 = vadd.f32 %v1610_v7, %v1609_v59 }
 0x427   :  { %v1612_v28 = vpop.f32.mrb[6].mxu1 }
 0x428   :  { %v1613_v30 = vpop.f32.mrb[7].mxu1 }
 0x429   :  { %v1614_v34 = vadd.f32 %v1613_v30, %v1612_v28 }
 0x433   :  { %v1736_v60 = vpop.f32.mrb[8].mxu1 }
 0x434   :  { %v1153_v40 = vpop.f32.mrb[9].mxu1 }
 0x447   :  { %v1647_v24 = vpop.f32.mrb[6].mxu0 }
 0x448   :  { %v1648_v54 = vpop.f32.mrb[7].mxu0 }
 0x449   :  { %v1649_v42 = vadd.f32 %v1648_v54, %v1647_v24 }
 0x44b   :  { %v1650_v32 = vpop.f32.mrb[8].mxu0  ;;  %v1073_v48 = vadd.f32 %v1649_v42, %v1611_v41 }
 0x44c   :  { %v1651_v9 = vpop.f32.mrb[9].mxu0 }
 0x44d   :  { %v1652_v31 = vadd.f32 %v1651_v9, %v1650_v32  ;;  %v1154_v43 = vadd.f32 %v1153_v40, %v1073_v48 }
 0x44f   :  { %v1078_v25 = vadd.f32 %v1652_v31, %v1614_v34  ;;  %1753 = vmatprep.mubr.msk.f32.mxu0 %vm81_vm0, %v1154_v43 }
 0x451   :  { %v1159_v46 = vadd.f32 %v1736_v60, %v1078_v25 }
 0x453   :  { %1754 = vmatmul.mubr.msk.f32.vlgmr.msra.gmra.mrb[10].mxu0 %vm81_vm0, %v1159_v46  ;;  %vm1271_vm0 = vcmask 261120  }
 0x526   :  { %v1755_v21 = vpop.f32.mrb[10].mxu0 }
 0x527   :  { %v1255_v37 = vadd.f32 %v1755_v21, %v1512_v49  ;;  %v1249_v10 = vpop.f32.mrb[11].mxu0 }
 0x528   :  { %v1250_v56 = vadd.f32 %v1512_v49, %v1249_v10 }
 0x529   :  { %v1259_v52 = vmax.f32 %v1255_v37, 0.0 }
 0x52a   :  { %v1258_v20 = vmax.f32 %v1250_v56, 0.0 }
 0x52c   :  { %1764 = vmatprep.mubr.msk.f32.mxu1 %vm1271_vm0, %v1258_v20 }
 0x52d   :  { %1765 = vmatmul.mubr.msk.f32.vlgmr.msra.gmra.mrb[10].mxu1 %vm1271_vm0, %v1259_v52 }
 0x52e   :  { %1961 = vmatpush3.bf16.msra.mxu1 %v1958_v14 }
 0x600   :  { %v1766_v45 = vpop.f32.mrb[10].mxu1 }
 0x601   :  { %v1350_v47 = vadd.f32 %v1766_v45, %v1515_v62  ;;  %v1344_v1 = vpop.f32.mrb[11].mxu1 }
 0x602   :  { %v1345_v6 = vadd.f32 %v1515_v62, %v1344_v1 }
 0x603   :  { %v1354_v15 = vmax.f32 %v1350_v47, 0.0 }
 0x604   :  { %v1353_v8 = vmax.f32 %v1345_v6, 0.0 }
 0x606   :  { %1771 = vmatprep.mubr.msk.f32.mxu1 %vm1364_vm7, %v1353_v8 }
 0x607   :  { %1772 = vmatmul.mubr.msk.f32.vlgmr.msra.gmra.mrb[12].mxu1 %vm1364_vm7, %v1354_v15 }
 0x6da   :  { %v1773_v18 = vpop.f32.mrb[12].mxu1 }
 0x6db   :  { %v1443_v57 = vadd.f32 %v1773_v18, %v1518_v0  ;;  %v1437_v4 = vpop.f32.mrb[13].mxu1 }
 0x6dc   :  { %v1438_v61 = vadd.f32 %v1518_v0, %v1437_v4 }
 0x6dd   :  { %1447 = vst [vmem:[#allocation2 + $0x8] sm:$0xff] %v1443_v57 }
 0x6de   :  { %1446 = vst [vmem:[#allocation2] sm:$0xff] %v1438_v61 }
 0x6df   :  { %2006 = shalt.err (!%p2003_p4)
}
 0x6e0   :  { %s2007_s14 = scalar_lea.hbm %s2932_s15, 256 }
 0x6e1   :  { %p2008_p5 = scmp.ne.s32.totalorder %s2932_s15, %s2007_s14  ;;  %p2011_p6 = scmp.lt.u32.totalorder %s2007_s14, %s2932_s15 }
 0x6e3   :  { %p2013_p7 = pnand %p2011_p6, %p2008_p5 }
 0x6e5   :  { %2016 = shalt.err (!%p2013_p7)
}
 0x6e6   :  { %s2022_s27 = smov 128   ;;  %s2023_s28 = smov 8  }
 0x6e7   :  { %1459 = dma.vmem_to_hbm [thread:$0]  %s1454_s24, 256, %s2932_s15, [#allocation3], %s2022_s27, %s2022_s27, %s2023_s28  }
 0x6e8   :  { %2017 = dma.done.wait [#allocation3], 256  }
 0x6e9   :  { %2018 = vsyncadd [#allocation3], 4294967040 }
 0x6ea   :  { %1463 = vsyncpa [#allocation3], 1 }

</bundles_post_ra>
